<compile_context>
chip_gen: v6e
topology: v6e:2x2x1
jax: 0.10.0
libtpu: 0.0.40
codegen_flags: <defaults>
</compile_context>

<pallas_src>
import functools
import numpy as np
import jax
import jax.numpy as jnp
from jax.experimental import pallas as pl
from jax.experimental.pallas import tpu as pltpu

H = W = 16
HW = H * W
C0, C1, C2 = 1, 32, 64
PH = PW = 4
OUT_DIM = 2
OUT_PAD = 128          # lane width of the per-step output slab
OUT_ROWS = 8           # sublane padding of the per-step output slab


def _tap_masks():
    """(9, HW) 0/1 masks: mask[k, h*W+w]==1 iff tap k's source pixel is in-bounds."""
    m = np.zeros((9, HW), np.float32)
    for dy in range(3):
        for dx in range(3):
            k = dy * 3 + dx
            for h in range(H):
                for w in range(W):
                    if 0 <= h + dy - 1 < H and 0 <= w + dx - 1 < W:
                        m[k, h * W + w] = 1.0
    return m


def simple_cnn_kernel(x_ref, masks_ref, w1_ref, b1_ref, w2_ref, b2_ref,
                      wbig_ref, sel_ref, bfc_ref, out_ref, patches_ref, *, shifts):
    # Hoisted constants (loaded once per grid step).
    masks_v = masks_ref[...]                                    # (9, L) f32
    mask_rows = [masks_v[k:k + 1, :] for k in range(9)]         # each (1, L)

    xrow = x_ref[0]                                             # (1, L) f32, nb imgs on lanes

    # ---- conv1 (Cin=1): masked lane-roll im2col (9, L) -> one f32 MXU matmul ----
    taps1 = []
    for k in range(9):
        sh = shifts[k]
        r = xrow if sh == 0 else pltpu.roll(xrow, shift=sh, axis=1)
        taps1.append(r * mask_rows[k])
    xt = jnp.concatenate(taps1, axis=0)                         # (9, L) f32
    y1 = jnp.dot(w1_ref[...], xt, preferred_element_type=jnp.float32)   # (C1, L)
    y1 = jnp.maximum(y1 + b1_ref[...], 0.0)

    # ---- conv2: stream masked-rolled taps as bf16 straight into scratch ----
    # (rolls/masks kept f32 for portability incl. v5e; cast happens at the store)
    for k in range(9):
        sh = shifts[k]
        r = y1 if sh == 0 else pltpu.roll(y1, shift=sh, axis=1)
        patches_ref[pl.ds(k * C1, C1), :] = (r * mask_rows[k]).astype(jnp.bfloat16)
    y2 = jnp.dot(w2_ref[...], patches_ref[...],
                 preferred_element_type=jnp.float32)            # (C2, L) f32
    y2 = jnp.maximum(y2 + b2_ref[...], 0.0)

    # ---- adaptive avg-pool + Linear (pool folded into wbig) ----
    # Channel (sublane) reduce first -> cheap VALU adds; then per-image lane
    # segment sums via one small f32 MXU matmul against the 0/1 selector.
    z0 = jnp.sum(y2 * wbig_ref[0], axis=0, keepdims=True)       # (1, L)
    z1 = jnp.sum(y2 * wbig_ref[1], axis=0, keepdims=True)       # (1, L)
    zc = jnp.concatenate([z0, z1], axis=0)                      # (2, L)
    p = jnp.dot(zc, sel_ref[...], preferred_element_type=jnp.float32)   # (2, 128)
    p = p + bfc_ref[...]                                        # (2, 1) bias broadcast

    # Single unmasked (8, 128) store per grid step.
    out_ref[...] = jnp.concatenate(
        [p, jnp.zeros((OUT_ROWS - OUT_DIM, OUT_PAD), jnp.float32)], axis=0)


def simple_cnn_forward(x_nchw, w1, b1, w2, b2, wfc, bfc, *, block_n=16):
    """x_nchw: (N,1,16,16). Weights in PyTorch layouts:
       w1 (32,1,3,3), b1 (32,), w2 (64,32,3,3), b2 (64,), wfc (2,1024), bfc (2,)."""
    N = x_nchw.shape[0]
    # nb images per grid step, concatenated along the lane axis (L = nb*HW lanes).
    # Keep the grid >= 2 steps when possible (v7x megacore) and cap nb so one
    # step's outputs fit a single 128-lane slab.
    nb = int(max(1, min(block_n, (N + 1) // 2, OUT_PAD)))
    g = (N + nb - 1) // nb
    npad = g * nb
    L = nb * HW

    x2 = x_nchw.reshape(N, HW).astype(jnp.float32)
    if npad > N:
        x2 = jnp.pad(x2, ((0, npad - N), (0, 0)))
    x3 = x2.reshape(g, 1, L)                                    # nb images per lane-row

    # Tap order k = dy*3 + dx (torch cross-correlation, padding=1); roll shifts
    # are taken modulo the batched lane length L.
    shifts = tuple((-((dy - 1) * W + (dx - 1))) % L
                   for dy in range(3) for dx in range(3))

    # Constants prepared host-side in their final layouts/dtypes.
    masks = jnp.asarray(np.tile(_tap_masks(), (1, nb)))         # (9, L) f32

    w1m = w1.reshape(C1, 9).astype(jnp.float32)                 # conv1 kept f32 (MXU)
    b1c = b1.reshape(C1, 1).astype(jnp.float32)
    w2m = jnp.transpose(w2, (0, 2, 3, 1)).reshape(C2, 9 * C1).astype(jnp.bfloat16)
    b2c = b2.reshape(C2, 1).astype(jnp.float32)

    # Exact 4x4 adaptive avg-pool folded into the FC weight, tiled per image.
    wfc_r = wfc.reshape(OUT_DIM, C2, PH, PW).astype(jnp.float32)
    wbig = jnp.repeat(jnp.repeat(wfc_r, H // PH, axis=2), W // PW, axis=3)
    wbig = (wbig / float((H // PH) * (W // PW))).reshape(OUT_DIM, C2, HW)
    wbig_t = jnp.tile(wbig, (1, 1, nb))                         # (2, C2, L) f32

    # 0/1 selector: column i sums image i's 256-lane segment (zero-padded to 128).
    sel_np = np.zeros((L, OUT_PAD), np.float32)
    sel_np[np.arange(L), np.arange(L) // HW] = 1.0
    sel = jnp.asarray(sel_np)                                   # (L, 128) f32

    bfc_c = bfc.reshape(OUT_DIM, 1).astype(jnp.float32)

    kernel = functools.partial(simple_cnn_kernel, shifts=shifts)

    out = pl.pallas_call(
        kernel,
        out_shape=jax.ShapeDtypeStruct((OUT_ROWS, g * OUT_PAD), jnp.float32),
        grid_spec=pltpu.PrefetchScalarGridSpec(
            num_scalar_prefetch=0,
            grid=(g,),
            in_specs=[
                pl.BlockSpec((1, 1, L), lambda i: (i, 0, 0)),            # x block
                pl.BlockSpec((9, L), lambda i: (0, 0)),                  # tap masks (tiled)
                pl.BlockSpec((C1, 9), lambda i: (0, 0)),                 # conv1 w (f32)
                pl.BlockSpec((C1, 1), lambda i: (0, 0)),                 # conv1 b
                pl.BlockSpec((C2, 9 * C1), lambda i: (0, 0)),            # conv2 w (bf16)
                pl.BlockSpec((C2, 1), lambda i: (0, 0)),                 # conv2 b
                pl.BlockSpec((OUT_DIM, C2, L), lambda i: (0, 0, 0)),     # pool-folded FC w
                pl.BlockSpec((L, OUT_PAD), lambda i: (0, 0)),            # lane-segment selector
                pl.BlockSpec((OUT_DIM, 1), lambda i: (0, 0)),            # FC bias
            ],
            out_specs=pl.BlockSpec((OUT_ROWS, OUT_PAD), lambda i: (0, i)),
            scratch_shapes=[pltpu.VMEM((9 * C1, L), jnp.bfloat16)],      # im2col patches
        ),
        compiler_params=pltpu.CompilerParams(
            dimension_semantics=("parallel",),
            vmem_limit_bytes=32 * 1024 * 1024),
    )(x3, masks, w1m, b1c, w2m, b2c, wbig_t, sel, bfc_c)

    # Unpack the (8, g*128) slab: sublane o = output o, lane j of block i = image i*nb+j.
    out = out.reshape(OUT_ROWS, g, OUT_PAD)[:OUT_DIM, :, :nb]   # (2, g, nb)
    return jnp.transpose(out, (1, 2, 0)).reshape(npad, OUT_DIM)[:N]


def reference_forward(x, w1, b1, w2, b2, wfc, bfc):
    """Pure-JAX reference matching the PyTorch module (NCHW, f32)."""
    dn = jax.lax.conv_dimension_numbers(x.shape, w1.shape, ('NCHW', 'OIHW', 'NCHW'))
    y = jax.lax.conv_general_dilated(x, w1, (1, 1), 'SAME', dimension_numbers=dn)
    y = jnp.maximum(y + b1[None, :, None, None], 0.0)
    dn2 = jax.lax.conv_dimension_numbers(y.shape, w2.shape, ('NCHW', 'OIHW', 'NCHW'))
    y = jax.lax.conv_general_dilated(y, w2, (1, 1), 'SAME', dimension_numbers=dn2)
    y = jnp.maximum(y + b2[None, :, None, None], 0.0)
    N = x.shape[0]
    y = y.reshape(N, C2, PH, H // PH, PW, W // PW).mean(axis=(3, 5))
    feat = y.reshape(N, C2 * PH * PW)
    return feat @ wfc.T + bfc[None, :]


if __name__ == "__main__":
    key = jax.random.PRNGKey(0)
    ks = jax.random.split(key, 7)
    x = jax.random.normal(ks[0], (2, 1, 16, 16), jnp.float32)
    w1 = jax.random.normal(ks[1], (C1, C0, 3, 3), jnp.float32) * 0.1
    b1 = jax.random.normal(ks[2], (C1,), jnp.float32) * 0.1
    w2 = jax.random.normal(ks[3], (C2, C1, 3, 3), jnp.float32) * 0.05
    b2 = jax.random.normal(ks[4], (C2,), jnp.float32) * 0.05
    wfc = jax.random.normal(ks[5], (OUT_DIM, C2 * PH * PW), jnp.float32) * 0.05
    bfc = jax.random.normal(ks[6], (OUT_DIM,), jnp.float32) * 0.05

    out = simple_cnn_forward(x, w1, b1, w2, b2, wfc, bfc)
    out = jax.block_until_ready(out)

    ref = reference_forward(x, w1, b1, w2, b2, wfc, bfc)
    assert out.shape == (2, OUT_DIM), out.shape
    assert jnp.allclose(out, ref, rtol=1e-2, atol=1e-2), (out, ref)
    print("KERNEL_OK")
</pallas_src>

<mosaic_0001>
module attributes {stable_mosaic.version = 11 : i64} {
  func.func @simple_cnn_kernel(%arg0: i32, %arg1: memref<1x1x256xf32, #tpu.memory_space<vmem>>, %arg2: memref<9x256xf32, #tpu.memory_space<vmem>>, %arg3: memref<32x9xf32, #tpu.memory_space<vmem>>, %arg4: memref<32x1xf32, #tpu.memory_space<vmem>>, %arg5: memref<64x288xbf16, #tpu.memory_space<vmem>>, %arg6: memref<64x1xf32, #tpu.memory_space<vmem>>, %arg7: memref<2x64x256xf32, #tpu.memory_space<vmem>>, %arg8: memref<256x128xf32, #tpu.memory_space<vmem>>, %arg9: memref<2x1xf32, #tpu.memory_space<vmem>>, %arg10: memref<8x128xf32, #tpu.memory_space<vmem>>, %arg11: memref<288x256xbf16, #tpu.memory_space<vmem>>) attributes {dimension_semantics = [#tpu.dimension_semantics<parallel>], iteration_bounds = array<i64: 2>, scalar_prefetch = 0 : i64, scratch_operands = 1 : i64, tpu.core_type = #tpu.core_type<tc>, window_params = [{transform_indices = @transform_0, window_bounds = array<i64: 1, 1, 256>}, {pipeline_mode = #tpu.pipeline_mode<synchronous>, transform_indices = @transform_1, window_bounds = array<i64: 9, 256>}, {pipeline_mode = #tpu.pipeline_mode<synchronous>, transform_indices = @transform_2, window_bounds = array<i64: 32, 9>}, {pipeline_mode = #tpu.pipeline_mode<synchronous>, transform_indices = @transform_3, window_bounds = array<i64: 32, 1>}, {pipeline_mode = #tpu.pipeline_mode<synchronous>, transform_indices = @transform_4, window_bounds = array<i64: 64, 288>}, {pipeline_mode = #tpu.pipeline_mode<synchronous>, transform_indices = @transform_5, window_bounds = array<i64: 64, 1>}, {pipeline_mode = #tpu.pipeline_mode<synchronous>, transform_indices = @transform_6, window_bounds = array<i64: 2, 64, 256>}, {pipeline_mode = #tpu.pipeline_mode<synchronous>, transform_indices = @transform_7, window_bounds = array<i64: 256, 128>}, {pipeline_mode = #tpu.pipeline_mode<synchronous>, transform_indices = @transform_8, window_bounds = array<i64: 2, 1>}, {transform_indices = @transform_9, window_bounds = array<i64: 8, 128>}]} {
    %c0 = arith.constant 0 : index
    %c0_0 = arith.constant 0 : index
    %0 = vector.load %arg2[%c0, %c0_0] : memref<9x256xf32, #tpu.memory_space<vmem>>, vector<9x256xf32>
    %1 = vector.extract_strided_slice %0 {offsets = [0, 0], sizes = [1, 256], strides = [1, 1]} : vector<9x256xf32> to vector<1x256xf32>
    %2 = vector.extract_strided_slice %0 {offsets = [1, 0], sizes = [1, 256], strides = [1, 1]} : vector<9x256xf32> to vector<1x256xf32>
    %3 = vector.extract_strided_slice %0 {offsets = [2, 0], sizes = [1, 256], strides = [1, 1]} : vector<9x256xf32> to vector<1x256xf32>
    %4 = vector.extract_strided_slice %0 {offsets = [3, 0], sizes = [1, 256], strides = [1, 1]} : vector<9x256xf32> to vector<1x256xf32>
    %5 = vector.extract_strided_slice %0 {offsets = [4, 0], sizes = [1, 256], strides = [1, 1]} : vector<9x256xf32> to vector<1x256xf32>
    %6 = vector.extract_strided_slice %0 {offsets = [5, 0], sizes = [1, 256], strides = [1, 1]} : vector<9x256xf32> to vector<1x256xf32>
    %7 = vector.extract_strided_slice %0 {offsets = [6, 0], sizes = [1, 256], strides = [1, 1]} : vector<9x256xf32> to vector<1x256xf32>
    %8 = vector.extract_strided_slice %0 {offsets = [7, 0], sizes = [1, 256], strides = [1, 1]} : vector<9x256xf32> to vector<1x256xf32>
    %9 = vector.extract_strided_slice %0 {offsets = [8, 0], sizes = [1, 256], strides = [1, 1]} : vector<9x256xf32> to vector<1x256xf32>
    %c0_1 = arith.constant 0 : index
    %c0_2 = arith.constant 0 : index
    %c0_3 = arith.constant 0 : index
    %10 = vector.load %arg1[%c0_1, %c0_2, %c0_3] : memref<1x1x256xf32, #tpu.memory_space<vmem>>, vector<1x1x256xf32>
    %11 = vector.shape_cast %10 : vector<1x1x256xf32> to vector<1x256xf32>
    %c17_i32 = arith.constant 17 : i32
    %12 = tpu.dynamic_rotate %11 by %c17_i32 dim 1 : vector<1x256xf32>, i32 -> vector<1x256xf32>
    %13 = arith.mulf %12, %1 : vector<1x256xf32>
    %c16_i32 = arith.constant 16 : i32
    %14 = tpu.dynamic_rotate %11 by %c16_i32 dim 1 : vector<1x256xf32>, i32 -> vector<1x256xf32>
    %15 = arith.mulf %14, %2 : vector<1x256xf32>
    %c15_i32 = arith.constant 15 : i32
    %16 = tpu.dynamic_rotate %11 by %c15_i32 dim 1 : vector<1x256xf32>, i32 -> vector<1x256xf32>
    %17 = arith.mulf %16, %3 : vector<1x256xf32>
    %c1_i32 = arith.constant 1 : i32
    %18 = tpu.dynamic_rotate %11 by %c1_i32 dim 1 : vector<1x256xf32>, i32 -> vector<1x256xf32>
    %19 = arith.mulf %18, %4 : vector<1x256xf32>
    %20 = arith.mulf %11, %5 : vector<1x256xf32>
    %c255_i32 = arith.constant 255 : i32
    %21 = tpu.dynamic_rotate %11 by %c255_i32 dim 1 : vector<1x256xf32>, i32 -> vector<1x256xf32>
    %22 = arith.mulf %21, %6 : vector<1x256xf32>
    %c241_i32 = arith.constant 241 : i32
    %23 = tpu.dynamic_rotate %11 by %c241_i32 dim 1 : vector<1x256xf32>, i32 -> vector<1x256xf32>
    %24 = arith.mulf %23, %7 : vector<1x256xf32>
    %c240_i32 = arith.constant 240 : i32
    %25 = tpu.dynamic_rotate %11 by %c240_i32 dim 1 : vector<1x256xf32>, i32 -> vector<1x256xf32>
    %26 = arith.mulf %25, %8 : vector<1x256xf32>
    %c239_i32 = arith.constant 239 : i32
    %27 = tpu.dynamic_rotate %11 by %c239_i32 dim 1 : vector<1x256xf32>, i32 -> vector<1x256xf32>
    %28 = arith.mulf %27, %9 : vector<1x256xf32>
    %29 = tpu.concatenate %13, %15, %17, %19, %20, %22, %24, %26, %28 in 0 : vector<1x256xf32>, vector<1x256xf32>, vector<1x256xf32>, vector<1x256xf32>, vector<1x256xf32>, vector<1x256xf32>, vector<1x256xf32>, vector<1x256xf32>, vector<1x256xf32> -> vector<9x256xf32>
    %c0_4 = arith.constant 0 : index
    %c0_5 = arith.constant 0 : index
    %30 = vector.load %arg3[%c0_4, %c0_5] : memref<32x9xf32, #tpu.memory_space<vmem>>, vector<32x9xf32>
    %cst = arith.constant dense<0.000000e+00> : vector<32x256xf32>
    %31 = tpu.matmul %30, %29, %cst {dimension_numbers = #tpu.dot_dimension_numbers<[1], [0], [0], [1], [0, 0, 1, 1], [], []>} : vector<32x9xf32>, vector<9x256xf32>, vector<32x256xf32> -> vector<32x256xf32>
    %c0_6 = arith.constant 0 : index
    %c0_7 = arith.constant 0 : index
    %32 = vector.load %arg4[%c0_6, %c0_7] : memref<32x1xf32, #tpu.memory_space<vmem>>, vector<32x1xf32>
    %33 = vector.broadcast %32 : vector<32x1xf32> to vector<32x256xf32>
    %34 = arith.addf %31, %33 : vector<32x256xf32>
    %cst_8 = arith.constant 0.000000e+00 : f32
    %35 = vector.broadcast %cst_8 : f32 to vector<32x256xf32>
    %36 = arith.maximumf %34, %35 : vector<32x256xf32>
    %c17_i32_9 = arith.constant 17 : i32
    %37 = tpu.dynamic_rotate %36 by %c17_i32_9 dim 1 : vector<32x256xf32>, i32 -> vector<32x256xf32>
    %38 = vector.broadcast %1 : vector<1x256xf32> to vector<32x256xf32>
    %39 = arith.mulf %37, %38 : vector<32x256xf32>
    %40 = arith.truncf %39 : vector<32x256xf32> to vector<32x256xbf16>
    %c0_10 = arith.constant 0 : index
    %c0_11 = arith.constant 0 : index
    %41 = vector.load %arg11[%c0_10, %c0_11] : memref<288x256xbf16, #tpu.memory_space<vmem>>, vector<32x256xbf16>
    tpu.vector_store %arg11[%c0_10, %c0_11], %40 {strides = array<i32>} : memref<288x256xbf16, #tpu.memory_space<vmem>>, vector<32x256xbf16>,
    %c16_i32_12 = arith.constant 16 : i32
    %42 = tpu.dynamic_rotate %36 by %c16_i32_12 dim 1 : vector<32x256xf32>, i32 -> vector<32x256xf32>
    %43 = vector.broadcast %2 : vector<1x256xf32> to vector<32x256xf32>
    %44 = arith.mulf %42, %43 : vector<32x256xf32>
    %45 = arith.truncf %44 : vector<32x256xf32> to vector<32x256xbf16>
    %c32 = arith.constant 32 : index
    %c0_13 = arith.constant 0 : index
    %46 = vector.load %arg11[%c32, %c0_13] : memref<288x256xbf16, #tpu.memory_space<vmem>>, vector<32x256xbf16>
    tpu.vector_store %arg11[%c32, %c0_13], %45 {strides = array<i32>} : memref<288x256xbf16, #tpu.memory_space<vmem>>, vector<32x256xbf16>,
    %c15_i32_14 = arith.constant 15 : i32
    %47 = tpu.dynamic_rotate %36 by %c15_i32_14 dim 1 : vector<32x256xf32>, i32 -> vector<32x256xf32>
    %48 = vector.broadcast %3 : vector<1x256xf32> to vector<32x256xf32>
    %49 = arith.mulf %47, %48 : vector<32x256xf32>
    %50 = arith.truncf %49 : vector<32x256xf32> to vector<32x256xbf16>
    %c64 = arith.constant 64 : index
    %c0_15 = arith.constant 0 : index
    %51 = vector.load %arg11[%c64, %c0_15] : memref<288x256xbf16, #tpu.memory_space<vmem>>, vector<32x256xbf16>
    tpu.vector_store %arg11[%c64, %c0_15], %50 {strides = array<i32>} : memref<288x256xbf16, #tpu.memory_space<vmem>>, vector<32x256xbf16>,
    %c1_i32_16 = arith.constant 1 : i32
    %52 = tpu.dynamic_rotate %36 by %c1_i32_16 dim 1 : vector<32x256xf32>, i32 -> vector<32x256xf32>
    %53 = vector.broadcast %4 : vector<1x256xf32> to vector<32x256xf32>
    %54 = arith.mulf %52, %53 : vector<32x256xf32>
    %55 = arith.truncf %54 : vector<32x256xf32> to vector<32x256xbf16>
    %c96 = arith.constant 96 : index
    %c0_17 = arith.constant 0 : index
    %56 = vector.load %arg11[%c96, %c0_17] : memref<288x256xbf16, #tpu.memory_space<vmem>>, vector<32x256xbf16>
    tpu.vector_store %arg11[%c96, %c0_17], %55 {strides = array<i32>} : memref<288x256xbf16, #tpu.memory_space<vmem>>, vector<32x256xbf16>,
    %57 = vector.broadcast %5 : vector<1x256xf32> to vector<32x256xf32>
    %58 = arith.mulf %36, %57 : vector<32x256xf32>
    %59 = arith.truncf %58 : vector<32x256xf32> to vector<32x256xbf16>
    %c128 = arith.constant 128 : index
    %c0_18 = arith.constant 0 : index
    %60 = vector.load %arg11[%c128, %c0_18] : memref<288x256xbf16, #tpu.memory_space<vmem>>, vector<32x256xbf16>
    tpu.vector_store %arg11[%c128, %c0_18], %59 {strides = array<i32>} : memref<288x256xbf16, #tpu.memory_space<vmem>>, vector<32x256xbf16>,
    %c255_i32_19 = arith.constant 255 : i32
    %61 = tpu.dynamic_rotate %36 by %c255_i32_19 dim 1 : vector<32x256xf32>, i32 -> vector<32x256xf32>
    %62 = vector.broadcast %6 : vector<1x256xf32> to vector<32x256xf32>
    %63 = arith.mulf %61, %62 : vector<32x256xf32>
    %64 = arith.truncf %63 : vector<32x256xf32> to vector<32x256xbf16>
    %c160 = arith.constant 160 : index
    %c0_20 = arith.constant 0 : index
    %65 = vector.load %arg11[%c160, %c0_20] : memref<288x256xbf16, #tpu.memory_space<vmem>>, vector<32x256xbf16>
    tpu.vector_store %arg11[%c160, %c0_20], %64 {strides = array<i32>} : memref<288x256xbf16, #tpu.memory_space<vmem>>, vector<32x256xbf16>,
    %c241_i32_21 = arith.constant 241 : i32
    %66 = tpu.dynamic_rotate %36 by %c241_i32_21 dim 1 : vector<32x256xf32>, i32 -> vector<32x256xf32>
    %67 = vector.broadcast %7 : vector<1x256xf32> to vector<32x256xf32>
    %68 = arith.mulf %66, %67 : vector<32x256xf32>
    %69 = arith.truncf %68 : vector<32x256xf32> to vector<32x256xbf16>
    %c192 = arith.constant 192 : index
    %c0_22 = arith.constant 0 : index
    %70 = vector.load %arg11[%c192, %c0_22] : memref<288x256xbf16, #tpu.memory_space<vmem>>, vector<32x256xbf16>
    tpu.vector_store %arg11[%c192, %c0_22], %69 {strides = array<i32>} : memref<288x256xbf16, #tpu.memory_space<vmem>>, vector<32x256xbf16>,
    %c240_i32_23 = arith.constant 240 : i32
    %71 = tpu.dynamic_rotate %36 by %c240_i32_23 dim 1 : vector<32x256xf32>, i32 -> vector<32x256xf32>
    %72 = vector.broadcast %8 : vector<1x256xf32> to vector<32x256xf32>
    %73 = arith.mulf %71, %72 : vector<32x256xf32>
    %74 = arith.truncf %73 : vector<32x256xf32> to vector<32x256xbf16>
    %c224 = arith.constant 224 : index
    %c0_24 = arith.constant 0 : index
    %75 = vector.load %arg11[%c224, %c0_24] : memref<288x256xbf16, #tpu.memory_space<vmem>>, vector<32x256xbf16>
    tpu.vector_store %arg11[%c224, %c0_24], %74 {strides = array<i32>} : memref<288x256xbf16, #tpu.memory_space<vmem>>, vector<32x256xbf16>,
    %c239_i32_25 = arith.constant 239 : i32
    %76 = tpu.dynamic_rotate %36 by %c239_i32_25 dim 1 : vector<32x256xf32>, i32 -> vector<32x256xf32>
    %77 = vector.broadcast %9 : vector<1x256xf32> to vector<32x256xf32>
    %78 = arith.mulf %76, %77 : vector<32x256xf32>
    %79 = arith.truncf %78 : vector<32x256xf32> to vector<32x256xbf16>
    %c256 = arith.constant 256 : index
    %c0_26 = arith.constant 0 : index
    %80 = vector.load %arg11[%c256, %c0_26] : memref<288x256xbf16, #tpu.memory_space<vmem>>, vector<32x256xbf16>
    tpu.vector_store %arg11[%c256, %c0_26], %79 {strides = array<i32>} : memref<288x256xbf16, #tpu.memory_space<vmem>>, vector<32x256xbf16>,
    %c0_27 = arith.constant 0 : index
    %c0_28 = arith.constant 0 : index
    %81 = vector.load %arg5[%c0_27, %c0_28] : memref<64x288xbf16, #tpu.memory_space<vmem>>, vector<64x288xbf16>
    %c0_29 = arith.constant 0 : index
    %c0_30 = arith.constant 0 : index
    %82 = vector.load %arg11[%c0_29, %c0_30] : memref<288x256xbf16, #tpu.memory_space<vmem>>, vector<288x256xbf16>
    %cst_31 = arith.constant dense<0.000000e+00> : vector<64x256xf32>
    %83 = tpu.matmul %81, %82, %cst_31 {dimension_numbers = #tpu.dot_dimension_numbers<[1], [0], [0], [1], [0, 0, 1, 1], [], []>} : vector<64x288xbf16>, vector<288x256xbf16>, vector<64x256xf32> -> vector<64x256xf32>
    %c0_32 = arith.constant 0 : index
    %c0_33 = arith.constant 0 : index
    %84 = vector.load %arg6[%c0_32, %c0_33] : memref<64x1xf32, #tpu.memory_space<vmem>>, vector<64x1xf32>
    %85 = vector.broadcast %84 : vector<64x1xf32> to vector<64x256xf32>
    %86 = arith.addf %83, %85 : vector<64x256xf32>
    %cst_34 = arith.constant 0.000000e+00 : f32
    %87 = vector.broadcast %cst_34 : f32 to vector<64x256xf32>
    %88 = arith.maximumf %86, %87 : vector<64x256xf32>
    %c0_35 = arith.constant 0 : index
    %c0_36 = arith.constant 0 : index
    %c0_37 = arith.constant 0 : index
    %89 = vector.load %arg7[%c0_35, %c0_36, %c0_37] : memref<2x64x256xf32, #tpu.memory_space<vmem>>, vector<1x64x256xf32>
    %90 = vector.shape_cast %89 : vector<1x64x256xf32> to vector<64x256xf32>
    %91 = arith.mulf %88, %90 : vector<64x256xf32>
    %cst_38 = arith.constant dense<0.000000e+00> : vector<256xf32>
    %92 = vector.multi_reduction <add>, %91, %cst_38 [0] : vector<64x256xf32> to vector<256xf32>
    %93 = vector.shape_cast %92 : vector<256xf32> to vector<1x256xf32>
    %c1 = arith.constant 1 : index
    %c0_39 = arith.constant 0 : index
    %c0_40 = arith.constant 0 : index
    %94 = vector.load %arg7[%c1, %c0_39, %c0_40] : memref<2x64x256xf32, #tpu.memory_space<vmem>>, vector<1x64x256xf32>
    %95 = vector.shape_cast %94 : vector<1x64x256xf32> to vector<64x256xf32>
    %96 = arith.mulf %88, %95 : vector<64x256xf32>
    %cst_41 = arith.constant dense<0.000000e+00> : vector<256xf32>
    %97 = vector.multi_reduction <add>, %96, %cst_41 [0] : vector<64x256xf32> to vector<256xf32>
    %98 = vector.shape_cast %97 : vector<256xf32> to vector<1x256xf32>
    %99 = tpu.concatenate %93, %98 in 0 : vector<1x256xf32>, vector<1x256xf32> -> vector<2x256xf32>
    %c0_42 = arith.constant 0 : index
    %c0_43 = arith.constant 0 : index
    %100 = vector.load %arg8[%c0_42, %c0_43] : memref<256x128xf32, #tpu.memory_space<vmem>>, vector<256x128xf32>
    %cst_44 = arith.constant dense<0.000000e+00> : vector<2x128xf32>
    %101 = tpu.matmul %99, %100, %cst_44 {dimension_numbers = #tpu.dot_dimension_numbers<[1], [0], [0], [1], [0, 0, 1, 1], [], []>} : vector<2x256xf32>, vector<256x128xf32>, vector<2x128xf32> -> vector<2x128xf32>
    %c0_45 = arith.constant 0 : index
    %c0_46 = arith.constant 0 : index
    %102 = vector.load %arg9[%c0_45, %c0_46] : memref<2x1xf32, #tpu.memory_space<vmem>>, vector<2x1xf32>
    %103 = vector.broadcast %102 : vector<2x1xf32> to vector<2x128xf32>
    %104 = arith.addf %101, %103 : vector<2x128xf32>
    %cst_47 = arith.constant 0.000000e+00 : f32
    %105 = vector.broadcast %cst_47 : f32 to vector<6x128xf32>
    %106 = tpu.concatenate %104, %105 in 0 : vector<2x128xf32>, vector<6x128xf32> -> vector<8x128xf32>
    %c0_48 = arith.constant 0 : index
    %c0_49 = arith.constant 0 : index
    %107 = vector.load %arg10[%c0_48, %c0_49] : memref<8x128xf32, #tpu.memory_space<vmem>>, vector<8x128xf32>
    tpu.vector_store %arg10[%c0_48, %c0_49], %106 {strides = array<i32>} : memref<8x128xf32, #tpu.memory_space<vmem>>, vector<8x128xf32>,
    return
  }
  func.func @transform_0(%arg0: i32) -> (i32, i32, i32) {
    %c0_i32 = arith.constant 0 : i32
    %c0_i32_0 = arith.constant 0 : i32
    %c0_i32_1 = arith.constant 0 : i32
    return %arg0, %c0_i32, %c0_i32_0 : i32, i32, i32
  }
  func.func @transform_1(%arg0: i32) -> (i32, i32) {
    %c0_i32 = arith.constant 0 : i32
    %c0_i32_0 = arith.constant 0 : i32
    %c0_i32_1 = arith.constant 0 : i32
    return %c0_i32, %c0_i32_0 : i32, i32
  }
  func.func @transform_2(%arg0: i32) -> (i32, i32) {
    %c0_i32 = arith.constant 0 : i32
    %c0_i32_0 = arith.constant 0 : i32
    %c0_i32_1 = arith.constant 0 : i32
    return %c0_i32, %c0_i32_0 : i32, i32
  }
  func.func @transform_3(%arg0: i32) -> (i32, i32) {
    %c0_i32 = arith.constant 0 : i32
    %c0_i32_0 = arith.constant 0 : i32
    %c0_i32_1 = arith.constant 0 : i32
    return %c0_i32, %c0_i32_0 : i32, i32
  }
  func.func @transform_4(%arg0: i32) -> (i32, i32) {
    %c0_i32 = arith.constant 0 : i32
    %c0_i32_0 = arith.constant 0 : i32
    %c0_i32_1 = arith.constant 0 : i32
    return %c0_i32, %c0_i32_0 : i32, i32
  }
  func.func @transform_5(%arg0: i32) -> (i32, i32) {
    %c0_i32 = arith.constant 0 : i32
    %c0_i32_0 = arith.constant 0 : i32
    %c0_i32_1 = arith.constant 0 : i32
    return %c0_i32, %c0_i32_0 : i32, i32
  }
  func.func @transform_6(%arg0: i32) -> (i32, i32, i32) {
    %c0_i32 = arith.constant 0 : i32
    %c0_i32_0 = arith.constant 0 : i32
    %c0_i32_1 = arith.constant 0 : i32
    %c0_i32_2 = arith.constant 0 : i32
    return %c0_i32, %c0_i32_0, %c0_i32_1 : i32, i32, i32
  }
  func.func @transform_7(%arg0: i32) -> (i32, i32) {
    %c0_i32 = arith.constant 0 : i32
    %c0_i32_0 = arith.constant 0 : i32
    %c0_i32_1 = arith.constant 0 : i32
    return %c0_i32, %c0_i32_0 : i32, i32
  }
  func.func @transform_8(%arg0: i32) -> (i32, i32) {
    %c0_i32 = arith.constant 0 : i32
    %c0_i32_0 = arith.constant 0 : i32
    %c0_i32_1 = arith.constant 0 : i32
    return %c0_i32, %c0_i32_0 : i32, i32
  }
  func.func @transform_9(%arg0: i32) -> (i32, i32) {
    %c0_i32 = arith.constant 0 : i32
    %c0_i32_0 = arith.constant 0 : i32
    return %c0_i32, %arg0 : i32, i32
  }
}

</mosaic_0001>

<bundles_post_ra>
// kernel: tpu_custom_call.1
= control target key start
LH: loop header
LB: loop body
LE: loop exit
PB: predicated region body
PF: predicated region fallthrough
CT: control target
= control target key end

     0   :  { %14 = vsyncpa [#allocation4], 0  ;;  %s3515_s0 = inlined_call_operand.vmem [shape: f32[2,1,256], index: 0, kind: input, shape index: {}]   ;;  %s3516_s1 = inlined_call_operand.vmem [shape: f32[9,256], index: 1, kind: input, shape index: {}]   ;;  %s3517_s2 = inlined_call_operand.vmem [shape: f32[32,9], index: 2, kind: input, shape index: {}]   ;;  %s3518_s3 = inlined_call_operand.vmem [shape: f32[32,1], index: 3, kind: input, shape index: {}]   ;;  %s3519_s4 = inlined_call_operand.vmem [shape: bf16[64,288], index: 4, kind: input, shape index: {}]   ;;  %s3520_s5 = inlined_call_operand.vmem [shape: f32[64,1], index: 5, kind: input, shape index: {}]   ;;  %s3521_s6 = inlined_call_operand.hbm [shape: f32[2,64,256], index: 6, kind: input, shape index: {}]   ;;  %s3522_s7 = inlined_call_operand.hbm [shape: f32[256,128], index: 7, kind: input, shape index: {}]   ;;  %s3523_s8 = inlined_call_operand.vmem [shape: f32[2,1], index: 8, kind: input, shape index: {}]   ;;  %s3524_s9 = inlined_call_operand.hbm [shape: f32[8,256], index: 9, kind: output, shape index: {}]  }
   0x1   :  { %15 = vsyncpa [#allocation7], 0 }
   0x2   :  { %16 = vsyncpa [#allocation5], 0 }
   0x3   :  { %18 = vsyncpa [#allocation5 + $0x1], 0  ;;  %s2630_s30 = smov 0   ;;  %s2632_s10 = smov 0  }
   0x4   :  { %s2634_s11 = smov 0   ;;  %s2636_s12 = smov 0  }
   0x5 LB: > { %s2651_s13 = sadd.s32 4294967295, %s2560_s12   ;;  %s2131_s14 = sadd.s32 4294967294, %s2560_s12   ;;  %s2560_s12 = sphi %s2636_s12, %s3586_s12   ;;  %s2556_s11 = sphi %s2634_s11, %s3585_s11   ;;  %s2552_s10 = sphi %s2632_s10, %s3584_s10   ;;  %s2548_s30 = sphi %s2630_s30, %s3583_s30  }
   0x6   : > { %s2655_s15 = sadd.s32 1, %s2560_s12   ;;  %s225_s16 = sadd.s32 1, %s2556_s11 }
   0x7   : > { %s222_s17 = ssub.s32 %s2560_s12, %s2655_s15  ;;  %p235_p0 = scmp.ne.s32.totalorder %s2556_s11, %s2552_s10 }
   0x8   : > { %p223_p1 = scmp.eq.s32.totalorder %s222_s17, 0  ;;  %p236_p2 = scmp.eq.s32.totalorder %s2651_s13, 1 }
   0x9   : > { %p241_p3 = scmp.ne.s32.totalorder %s2552_s10, %s2548_s30  ;;  %p242_p4 = scmp.eq.s32.totalorder %s2131_s14, 1 }
   0xa   : > { %s2666_s18 = scalar_select %p223_p1, %s2556_s11, %s225_s16  }
   0xb   : > { %p2668_p5 = por %p236_p2, %p235_p0  ;;  %p2672_p6 = por %p242_p4, %p241_p3 }
   0xc   : > { %3543 = sst [smem:[#allocation12_spill]] %s2666_s18  ;;  %p2132_p7 = scmp.ge.s32.totalorder %s2560_s12, 1 }
   0xd   : > { %s3545_s20 = scalar_select %p2672_p6, 1, 0 }
   0xe   : > { %p249_p8 = scmp.lt.s32.totalorder %s2560_s12, 3  ;;  %p3525_p9 = scmp.eq.s32.totalorder %s2651_s13, 0 }
   0xf   : > { %s2562_s22 = smov [#allocation3]   ;;  %s2563_s25 = smov [#allocation6]  }
  0x10   : > { %p2679_p10 = pnand %p2132_p7, %p249_p8  ;;  %s276_s23 = sshll.u32 %s2562_s22, 4  ;;  %s277_s23 = int_to_ptr.vmem [resolvable:$true] %s276_s23 }
  0x11   : > { %s289_s26 = sshll.u32 %s2563_s25, 4  ;;  %s2451_s27 = scalar_lea.vmem %s277_s23, 4096  ;;  %s290_s26 = int_to_ptr.vmem [resolvable:$true] %s289_s26 }
  0x12   : > { %p2356_p11 = pneg %p2679_p10  ;;  %p2452_p0 = scmp.ne.s32.totalorder %s277_s23, %s2451_s27 }
  0x13   : > { %p2459_p3 = scmp.lt.s32.totalorder %s277_s23, %s277_s23  ;;  %p2460_p4 = scmp.lt.s32.totalorder %s2451_s27, %s2451_s27 }
  0x14   : > { %p2687_p12 = pnand %p3525_p9, %p2356_p11 }
  0x15   : > { %p2461_p7 = por %p2460_p4, %p2459_p3 }
  0x16   : > { %p2442_p13 = pneg %p2687_p12 }
  0x18   : > { %p2454_p1 = pnand %p2452_p0, %p2442_p13 }
  0x1a   : > { %p2455_p2 = pneg %p2454_p1 }
  0x1c   : > { %p2462_p8 = pnand %p2461_p7, %p2455_p2 }
  0x1e   : > { %2465 = shalt.err (!%p2462_p8)
}
  0x1f   : > { %s2564_s28 = smov 256   ;;  %s2565_s29 = smov 16  }
  0x20   : > { %2359 = dma.hbm_to_vmem [thread:$0]  (!%p2687_p12), %s3521_s6, 4096, %s277_s23, [#allocation4], %s2564_s28, %s2564_s28, %s2565_s29  }
  0x21   : > { %s2477_s17 = scalar_lea.vmem %s290_s26, 4096  ;;  %p2485_p9 = scmp.lt.s32.totalorder %s290_s26, %s290_s26 }
  0x22   : > { %p2478_p11 = scmp.ne.s32.totalorder %s290_s26, %s2477_s17  ;;  %p2486_p6 = scmp.lt.s32.totalorder %s2477_s17, %s2477_s17 }
  0x24   : > { %p2480_p0 = pnand %p2478_p11, %p2442_p13  ;;  %p2487_p3 = por %p2486_p6, %p2485_p9 }
  0x26   : > { %p2481_p1 = pneg %p2480_p0 }
  0x28   : > { %p2488_p2 = pnand %p2487_p3, %p2481_p1 }
  0x2a   : > { %2491 = shalt.err (!%p2488_p2)
}
  0x2b   : > { %s2566_s22 = smov 128   ;;  %s2567_s25 = smov 8  }
  0x2c   : > { %2362 = dma.hbm_to_vmem [thread:$0]  (!%p2687_p12), %s3522_s7, 4096, %s290_s26, [#allocation7], %s2566_s22, %s2566_s22, %s2567_s25  }
  0x2d   : > { %315 = sbr.rel (%p2679_p10) target bundleno = 1122 (0x462), region = 56 }
  0x32   : > { %p3548_p4 = scmp.eq.s32.totalorder %s2651_s13, 0 }
  0x34   : > { %2535 = dma.done.wait (%p3548_p4), [#allocation4], 4096   ;;  %p3549_p13 = pmov %p3548_p4 }
  0x35   : > { %p3550_p6 = pmov %p3548_p4 }
  0x36   : > { %2537 = vsyncadd (%p3549_p13), [#allocation4], 4294963200 }
  0x37   : > { %2539 = dma.done.wait (%p3550_p6), [#allocation7], 4096   ;;  %p3551_p9 = pmov %p3548_p4 }
  0x38   : > { %p354_p7 = scmp.lt.s32.totalorder %s2651_s13, 1  ;;  %v365_v0 = vlaneseq  ;;  %s2568_s28 = smov 15   ;;  %v2574_v7 = vmov 0.0   ;;  %v567_v8 = vld [vmem:[%s3518_s3 + $0x18] sm:$0xff]  ;;  %v566_v9 = vld [vmem:[%s3518_s3 + $0x10] sm:$0xff]  ;;  %v3532_v10 = vmov 0  }
  0x39   : > { %2541 = vsyncadd (%p3551_p9), [#allocation7], 4294963200  ;;  %s2569_s29 = smov 16   ;;  %s2570_s14 = smov 17   ;;  %671 = vmatprep.mubr.f32.mxu0 %v2574_v7  ;;  %2422 = vset.pattern.permute.xlu1 %v3532_v10  ;;  %v564_v11 = vld [vmem:[%s3518_s3] sm:$0xff]  ;;  %v565_v12 = vld [vmem:[%s3518_s3 + $0x8] sm:$0xff] }
  0x3a   : > { %s355_s18 = scalar_select %p354_p7, %s2651_s13, 1  ;;  %v2721_v1 = vshrl.u32 %v365_v0, 7  ;;  %2421 = vset.pattern.permute.xlu0 %v3532_v10  ;;  %v2578_v13 = vmov 1966171168   ;;  %v2772_v18 = vld [vmem:[%s3516_s1] sm:$0xff]  ;;  %v2777_v19 = vld [vmem:[%s3516_s1 + $0x8] sm:$0xff] }
  0x3b   : > { %s2571_s16 = smov 1   ;;  %s3526_s17 = smov 127   ;;  %v429_v14 = vunpack.c.l.s4 %v2578_v13  ;;  %v427_v20 = vcombine.high %v2772_v18, %v2777_v19  ;;  %v2782_v25 = vand.u32 127, %v365_v0  ;;  %v408_v29 = vrot.slane %v2772_v18, 2 }
  0x3c   : > { %s2140_s21 = sshll.u32 %s355_s18, 1  ;;  %v2724_v2 = vsub.s32 0, %v2721_v1  ;;  %v2730_v3 = vsub.s32 1, %v2721_v1  ;;  %s3530_s22 = smov 113   ;;  %vm539_vm3 = vcmask 1040384   ;;  %v409_v32 = vrot.slane %v2777_v19, 2 }
  0x3d   : > { %s357_s26 = scalar_lea.vmem %s3515_s0, %s2140_s21  ;;  %s2575_s25 = smov 112   ;;  %v430_v15 = vunpack.c.0.s8 %v429_v14  ;;  %vm390_vm0 = vcmp.lt.s32.totalorder %v2782_v25, 16  ;;  %vm405_vm1 = vcmp.lt.s32.totalorder %v2782_v25, 15  ;;  %vm381_vm2 = vcmp.lt.s32.totalorder %v2782_v25, 17 }
  0x3e   : > { %3552 = vst [vmem:[#allocation13_spill] sm:$0xff] %v2724_v2  ;;  %v2732_v4 = vld [vmem:[%s357_s26] sm:$0x3]  ;;  %s3528_s27 = smov 111   ;;  %v395_v33 = vrot.slane %v2772_v18, 1  ;;  %v396_v34 = vrot.slane %v2777_v19, 1 }
  0x3f   : > { %v368_v5 = vrot.slane %v2732_v4, %v2724_v2  ;;  %v372_v6 = vrot.slane %v2732_v4, %v2730_v3  ;;  %v433_v21 = vsub.s32 %v430_v15, %v2721_v1  ;;  %vm418_vm4 = vcmp.lt.s32.totalorder %v2782_v25, 1  ;;  %s3560_s18 = smov 113   ;;  %s351_s21 = sand.u32 1, %s2552_s10  }
  0x40   : > { %v421_v36 = vrot.slane %v2772_v18, 3  ;;  %v422_v37 = vrot.slane %v2777_v19, 3  ;;  %vm542_vm5 = vcmask 1041408   ;;  %vm448_vm6 = vcmp.lt.s32.totalorder %v2782_v25, 127  ;;  %s2139_s23 = sshll.u32 %s351_s21, 3  ;;  %s2236_s24 = sshll.u32 %s2651_s13, 7 }
  0x41   : > { %401 = vrot.lane.b32.xlu1 %v368_v5, %s2568_s28  ;;  %386 = vrot.lane.b32.xlu0 %v368_v5, %s2569_s29  ;;  %v434_v24 = vrot.slane %v427_v20, %v433_v21  ;;  %v451_v40 = vrot.slane %v2772_v18, 5  ;;  %v452_v41 = vrot.slane %v2777_v19, 5  ;;  %vm545_vm7 = vcmask 1042432   ;;  %s2579_s13 = smov [#allocation8]  }
  0x42   : > { %vm461_vm8 = vcmp.lt.s32.totalorder %v2782_v25, 113  ;;  %v464_v50 = vrot.slane %v2772_v18, 6  ;;  %v465_v53 = vrot.slane %v2777_v19, 6  ;;  %vm548_vm9 = vcmask 1043456  }
  0x43   : > { %v441_v28 = vrot.slane %v434_v24, %v433_v21  ;;  %vm474_vm10 = vcmp.lt.s32.totalorder %v2782_v25, 112  ;;  %vm551_vm11 = vcmask 1044480   ;;  %vm487_vm12 = vcmp.lt.s32.totalorder %v2782_v25, 111  ;;  %v2427_v25 = vld [vmem:[%s3519_s4 + $0x8] ss:$12 sps:$4 sm:$0xff]  }
  0x44   : > { %vm554_vm13 = vcmask 1045504   ;;  %vm557_vm14 = vcmask 1046528   ;;  %vm588_vm15 = vcmask 72704  }
  0x45   : > { %403 = vrot.lane.b32.xlu1 %v372_v6, %s2568_s28  ;;  %388 = vrot.lane.b32.xlu0 %v372_v6, %s2569_s29  ;;  %v2797_v38 = vmul.f32 %v441_v28, %v2732_v4 }
  0x47   : > { %v518_v54 = vrot.slane %v2797_v38, %v2730_v3  ;;  %v514_v58 = vrot.slane %v2797_v38, %v2724_v2 }
  0x49   : > { %377 = vrot.lane.b32.xlu1 %v372_v6, %s2570_s14  ;;  %375 = vrot.lane.b32.xlu0 %v368_v5, %s2570_s14 }
  0x4d   : > { %416 = vrot.lane.b32.xlu1 %v372_v6, %s2571_s16  ;;  %414 = vrot.lane.b32.xlu0 %v368_v5, %s2571_s16 }
  0x51   : > { %446 = vrot.lane.b32.xlu1 %v372_v6, %s3526_s17  ;;  %444 = vrot.lane.b32.xlu0 %v368_v5, %s3526_s17  ;;  %s353_s17 = scalar_lea.vmem [#allocation8], %s2139_s23 }
  0x55   : > { %459 = vrot.lane.b32.xlu1 %v372_v6, %s3530_s22  ;;  %457 = vrot.lane.b32.xlu0 %v368_v5, %s3530_s22  ;;  %s2050_s22 = sshll.u32 %s353_s17, 4  ;;  %s2051_s22 = int_to_ptr.vmem [resolvable:$true] %s2050_s22 }
  0x59   : > { %472 = vrot.lane.b32.xlu1 %v372_v6, %s2575_s25  ;;  %470 = vrot.lane.b32.xlu0 %v368_v5, %s2575_s25 }
  0x5d   : > { %485 = vrot.lane.b32.xlu1 %v372_v6, %s3528_s27  ;;  %483 = vrot.lane.b32.xlu0 %v368_v5, %s3528_s27 }
  0x61   : > { %585 = vperm.xlu1 %2422, %v567_v8   ;;  %580 = vperm.xlu0 %2421, %v566_v9  }
  0x65   : > { %570 = vperm.xlu1 %2422, %v564_v11   ;;  %575 = vperm.xlu0 %2421, %v565_v12   ;;  %v477_v11 = vrot.slane %v2772_v18, 7  ;;  %v478_v12 = vrot.slane %v2777_v19, 7 }
  0xb3   : > { %v402_v16 = vpop.permute.xlu1 %401  ;;  %v387_v17 = vpop.permute.xlu0 %386 }
  0xb7   : > { %v404_v22 = vpop.permute.xlu1 %403  ;;  %v389_v23 = vpop.permute.xlu0 %388 }
  0xb8   : > { %v391_v35 = vsel %vm390_vm0, %v387_v17, %v389_v23  ;;  %v392_v39 = vsel %vm390_vm0, %v389_v23, %v387_v17  ;;  %v406_v42 = vsel %vm405_vm1, %v402_v16, %v404_v22  ;;  %v407_v51 = vsel %vm405_vm1, %v404_v22, %v402_v16 }
  0xb9   : > { %v400_v47 = vmul.f32 %v396_v34, %v391_v35  ;;  %v399_v52 = vmul.f32 %v395_v33, %v392_v39  ;;  %v413_v55 = vmul.f32 %v409_v32, %v406_v42  ;;  %v412_v0 = vmul.f32 %v408_v29, %v407_v51 }
  0xbb   : > { %v378_v26 = vpop.permute.xlu1 %377  ;;  %v376_v27 = vpop.permute.xlu0 %375  ;;  %v495_v4 = vrot.slane %v400_v47, 7  ;;  %v494_v8 = vrot.slane %v399_v52, 7  ;;  %v501_v13 = vrot.slane %v413_v55, 6 }
  0xbc   : > { %v382_v43 = vsel %vm381_vm2, %v376_v27, %v378_v26  ;;  %v383_v48 = vsel %vm381_vm2, %v378_v26, %v376_v27  ;;  %v500_v26 = vrot.slane %v412_v0, 6 }
  0xbd   : > { %v385_v56 = vmul.f32 %v382_v43, %v2777_v19  ;;  %v384_v59 = vmul.f32 %v383_v48, %v2772_v18 }
  0xbf   : > { %v417_v30 = vpop.permute.xlu1 %416  ;;  %v415_v31 = vpop.permute.xlu0 %414  ;;  %v541_v14 = vsel %vm539_vm3, %v385_v56, %v495_v4  ;;  %v540_v17 = vsel %vm539_vm3, %v384_v59, %v494_v8  ;;  %v561_v59 = vld [vmem:[%s3517_s2 + $0x8] sm:$0xff] }
  0xc0   : > { %v419_v44 = vsel %vm418_vm4, %v415_v31, %v417_v30  ;;  %v420_v49 = vsel %vm418_vm4, %v417_v30, %v415_v31  ;;  %v544_v30 = vsel %vm542_vm5, %v541_v14, %v501_v13  ;;  %v543_v33 = vsel %vm542_vm5, %v540_v17, %v500_v26 }
  0xc1   : > { %v426_v57 = vmul.f32 %v422_v37, %v419_v44  ;;  %v425_v60 = vmul.f32 %v421_v36, %v420_v49  ;;  %v2849_v36 = vld [vmem:[%s3516_s1 + $0x10] sm:$0x1]  ;;  %v2854_v37 = vld [vmem:[%s3516_s1 + $0x18] sm:$0x1] }
  0xc2   : > { %3553 = vst [vmem:[#allocation14_spill] sm:$0xff] %v2849_v36  ;;  %3554 = vst [vmem:[#allocation15_spill] sm:$0xff] %v2854_v37 }
  0xc3   : > { %v447_v45 = vpop.permute.xlu1 %446  ;;  %v445_v46 = vpop.permute.xlu0 %444  ;;  %v507_v15 = vrot.slane %v426_v57, 5  ;;  %v506_v20 = vrot.slane %v425_v60, 5  ;;  %v562_v60 = vld [vmem:[%s3517_s2 + $0x10] sm:$0xff] }
  0xc4   : > { %v450_v61 = vsel %vm448_vm6, %v447_v45, %v445_v46  ;;  %v449_v5 = vsel %vm448_vm6, %v445_v46, %v447_v45 }
  0xc5   : > { %v456_v16 = vmul.f32 %v452_v41, %v450_v61  ;;  %v455_v21 = vmul.f32 %v451_v40, %v449_v5  ;;  %v547_v34 = vsel %vm545_vm7, %v544_v30, %v507_v15  ;;  %v546_v38 = vsel %vm545_vm7, %v543_v33, %v506_v20  ;;  %v563_v61 = vld [vmem:[%s3517_s2 + $0x18] sm:$0xff] }
  0xc6   : > { %v549_v52 = vsel %vm548_vm9, %v546_v38, %v514_v58  ;;  %v2426_v38 = vld [vmem:[%s3519_s4 + $0x4] ss:$12 sps:$4 sm:$0xff]  }
  0xc7   : > { %v460_v62 = vpop.permute.xlu1 %459  ;;  %v458_v63 = vpop.permute.xlu0 %457  ;;  %v524_v35 = vrot.slane %v456_v16, 3  ;;  %v523_v39 = vrot.slane %v455_v21, 3  ;;  %1677 = vmatprep.mubr.bf16.mxu1 %v2426_v38 }
  0xc8   : > { %v463_v6 = vsel %vm461_vm8, %v460_v62, %v458_v63  ;;  %v462_v9 = vsel %vm461_vm8, %v458_v63, %v460_v62 }
  0xc9   : > { %v469_v22 = vmul.f32 %v465_v53, %v463_v6  ;;  %v468_v27 = vmul.f32 %v464_v50, %v462_v9  ;;  %v550_v50 = vsel %vm548_vm9, %v547_v34, %v518_v54  ;;  %v552_v55 = vsel %vm551_vm11, %v549_v52, %v523_v39  ;;  %v560_v54 = vld [vmem:[%s3517_s2] sm:$0xff] }
  0xca   : > { %v553_v51 = vsel %vm551_vm11, %v550_v50, %v524_v35  ;;  %v1348_v50 = vld [vmem:[%s3520_s5 + $0x20] sm:$0xff] }
  0xcb   : > { %v473_v23 = vpop.permute.xlu1 %472  ;;  %v471_v24 = vpop.permute.xlu0 %470  ;;  %v530_v40 = vrot.slane %v469_v22, 2  ;;  %v529_v43 = vrot.slane %v468_v27, 2 }
  0xcc   : > { %v475_v28 = vsel %vm474_vm10, %v471_v24, %v473_v23  ;;  %v476_v29 = vsel %vm474_vm10, %v473_v23, %v471_v24 }
  0xcd   : > { %v481_v31 = vmul.f32 %v477_v11, %v475_v28  ;;  %v482_v32 = vmul.f32 %v478_v12, %v476_v29  ;;  %v556_v53 = vsel %vm554_vm13, %v553_v51, %v530_v40  ;;  %v555_v57 = vsel %vm554_vm13, %v552_v55, %v529_v43 }
  0xce   : > { %v866_v55 = vsub.s32 2, %v2721_v1 }
  0xcf   : > { %v486_v41 = vpop.permute.xlu1 %485  ;;  %v484_v42 = vpop.permute.xlu0 %483  ;;  %v536_v44 = vrot.slane %v482_v32, 1  ;;  %v535_v47 = vrot.slane %v481_v31, 1 }
  0xd0   : > { %v488_v45 = vsel %vm487_vm12, %v484_v42, %v486_v41  ;;  %v489_v46 = vsel %vm487_vm12, %v486_v41, %v484_v42  ;;  %v1344_v41 = vld [vmem:[%s3520_s5] sm:$0xff] }
  0xd1   : > { %v490_v48 = vmul.f32 %v488_v45, %v2849_v36  ;;  %v491_v49 = vmul.f32 %v489_v46, %v2854_v37  ;;  %v559_v56 = vsel %vm557_vm14, %v556_v53, %v536_v44  ;;  %v558_v58 = vsel %vm557_vm14, %v555_v57, %v535_v47  ;;  %v1345_v44 = vld [vmem:[%s3520_s5 + $0x8] sm:$0xff]  ;;  %v1346_v45 = vld [vmem:[%s3520_s5 + $0x10] sm:$0xff] }
  0xd2   : > { %v1349_v57 = vld [vmem:[%s3520_s5 + $0x28] sm:$0xff] }
  0xd3   : > { %2141 = vmatprep.subr.msk.mxu0 %vm539_vm3, %v491_v49  ;;  %v1347_v49 = vld [vmem:[%s3520_s5 + $0x18] sm:$0xff] }
  0xd4   : > { %2142 = vmatpush1.msk.msra.mxu0 %vm539_vm3, %v490_v48  ;;  %v934_v48 = vsub.s32 3, %v2721_v1 }
  0xd5   : > { %637 = vmatprep.subr.mxu0 %v559_v56 }
  0xd6   : > { %638 = vmatpush1.msra.mxu0 %v558_v58  ;;  %v3069_v53 = vrot.slane %v2772_v18, %v934_v48 }
  0xd7   : > { %2143 = vmatmul.mubr.msk.f32.vlgmr.msra.gmra.mxu0 %vm588_vm15, %v560_v54 }
  0xd8   : > { %677 = vmatprep.mubr.f32.mxu0 %v2574_v7 }
  0xdb   : > { %2144 = vmatmul.mubr.msk.f32.gmra.mxu0 %vm588_vm15, %v561_v59  ;;  %v1350_v59 = vld [vmem:[%s3520_s5 + $0x30] sm:$0xff] }
  0xdc   : > { %683 = vmatprep.mubr.f32.mxu0 %v2574_v7  ;;  %v586_v62 = vpop.permute.xlu1 %585  ;;  %v581_v63 = vpop.permute.xlu0 %580 }
  0xdf   : > { %2145 = vmatmul.mubr.msk.f32.gmra.mxu0 %vm588_vm15, %v562_v60 }
  0xe0   : > { %689 = vmatprep.mubr.f32.mxu0 %v2574_v7  ;;  %v571_v0 = vpop.permute.xlu1 %570  ;;  %v576_v9 = vpop.permute.xlu0 %575 }
  0xe3   : > { %2146 = vmatmul.mubr.msk.f32.gmra.mxu0 %vm588_vm15, %v563_v61 }
  0xe4   : > { %1750 = vmatprep.mubr.bf16.mxu0 %v3532_v10 }
 0x197   : > { %v673_v4 = vpop.f32.mrf.mxu0 }
 0x198   : > { %v674_v5 = vadd.f32 %v673_v4, %v571_v0 }
 0x199   : > { %v675_v6 = vpop.f32.mrf.mxu0 }
 0x19a   : > { %v2889_v8 = vmax.f32 %v674_v5, 0.0  ;;  %v676_v13 = vadd.f32 %v675_v6, %v571_v0  ;;  %v3098_v0 = vrot.slane %v2777_v19, %v866_v55  ;;  %v1351_v6 = vld [vmem:[%s3520_s5 + $0x38] sm:$0xff] }
 0x19b   : > { %v679_v11 = vpop.f32.mrf.mxu0 }
 0x19c   : > { %3555 = vst [vmem:[#allocation16_spill] sm:$0xff] %v2889_v8  ;;  %v680_v12 = vadd.f32 %v679_v11, %v576_v9  ;;  %908 = vrot.lane.b32.xlu1 %v2889_v8, %s2571_s16  ;;  %v2911_v15 = vmax.f32 %v676_v13, 0.0 }
 0x19d   : > { %v681_v14 = vpop.f32.mrf.mxu0 }
 0x19e   : > { %v2893_v7 = vmax.f32 %v680_v12, 0.0  ;;  %3557 = vst [vmem:[#allocation18_spill] sm:$0xff] %v2911_v15  ;;  %v682_v16 = vadd.f32 %v681_v14, %v576_v9  ;;  %v1958_v12 = vld [vmem:[%s3523_s8] sm:$0x3] }
 0x19f   : > { %v685_v20 = vpop.f32.mrf.mxu0 }
 0x1a0   : > { %3556 = vst [vmem:[#allocation17_spill] sm:$0xff] %v2893_v7  ;;  %910 = vrot.lane.b32.xlu0 %v2893_v7, %s2571_s16  ;;  %840 = vrot.lane.b32.xlu1 %v2889_v8, %s2568_s28  ;;  %v2917_v17 = vmax.f32 %v682_v16, 0.0  ;;  %v686_v22 = vadd.f32 %v685_v20, %v581_v63  ;;  %v3118_v20 = vrot.slane %v2772_v18, %v2730_v3 }
 0x1a1   : > { %v687_v21 = vpop.f32.mrf.mxu0 }
 0x1a2   : > { %3558 = vst [vmem:[#allocation19_spill] sm:$0xff] %v2917_v17  ;;  %v2935_v24 = vmax.f32 %v686_v22, 0.0  ;;  %v688_v28 = vadd.f32 %v687_v21, %v581_v63  ;;  %v3095_v63 = vrot.slane %v2772_v18, %v866_v55  ;;  %v3122_v21 = vrot.slane %v2777_v19, %v2730_v3 }
 0x1a3   : > { %v691_v23 = vpop.f32.mrf.mxu0 }
 0x1a4   : > { %842 = vrot.lane.b32.xlu0 %v2893_v7, %s2568_s28  ;;  %772 = vrot.lane.b32.xlu1 %v2889_v8, %s2569_s29  ;;  %3559 = vst [vmem:[#allocation20_spill] sm:$0xff] %v2935_v24  ;;  %v692_v26 = vadd.f32 %v691_v23, %v586_v62  ;;  %v2959_v30 = vmax.f32 %v688_v28, 0.0 }
 0x1a5   : > { %v693_v29 = vpop.f32.mrf.mxu0 }
 0x1a6   : > { %v2941_v27 = vmax.f32 %v692_v26, 0.0  ;;  %v694_v31 = vadd.f32 %v693_v29, %v586_v62 }
 0x1a8   : > { %774 = vrot.lane.b32.xlu0 %v2893_v7, %s2569_s29  ;;  %704 = vrot.lane.b32.xlu1 %v2889_v8, %s2570_s14  ;;  %v2965_v32 = vmax.f32 %v694_v31, 0.0 }
 0x1ac   : > { %706 = vrot.lane.b32.xlu0 %v2893_v7, %s2570_s14  ;;  %1156 = vrot.lane.b32.xlu1 %v2889_v8, %s2575_s25 }
 0x1b0   : > { %1158 = vrot.lane.b32.xlu0 %v2893_v7, %s2575_s25  ;;  %916 = vrot.lane.b32.xlu1 %v2911_v15, %s2571_s16 }
 0x1b4   : > { %918 = vrot.lane.b32.xlu0 %v2917_v17, %s2571_s16  ;;  %848 = vrot.lane.b32.xlu1 %v2911_v15, %s2568_s28 }
 0x1b8   : > { %850 = vrot.lane.b32.xlu0 %v2917_v17, %s2568_s28  ;;  %780 = vrot.lane.b32.xlu1 %v2911_v15, %s2569_s29 }
 0x1bc   : > { %782 = vrot.lane.b32.xlu0 %v2917_v17, %s2569_s29  ;;  %712 = vrot.lane.b32.xlu1 %v2911_v15, %s2570_s14 }
 0x1c0   : > { %714 = vrot.lane.b32.xlu0 %v2917_v17, %s2570_s14  ;;  %1164 = vrot.lane.b32.xlu1 %v2911_v15, %s2575_s25 }
 0x1c4   : > { %1166 = vrot.lane.b32.xlu0 %v2917_v17, %s2575_s25  ;;  %912 = vrot.lane.b32.xlu1 %v2935_v24, %s2571_s16 }
 0x1c8   : > { %914 = vrot.lane.b32.xlu0 %v2941_v27, %s2571_s16  ;;  %844 = vrot.lane.b32.xlu1 %v2935_v24, %s2568_s28 }
 0x1cc   : > { %846 = vrot.lane.b32.xlu0 %v2941_v27, %s2568_s28  ;;  %776 = vrot.lane.b32.xlu1 %v2935_v24, %s2569_s29 }
 0x1d0   : > { %778 = vrot.lane.b32.xlu0 %v2941_v27, %s2569_s29  ;;  %708 = vrot.lane.b32.xlu1 %v2935_v24, %s2570_s14 }
 0x1d4   : > { %710 = vrot.lane.b32.xlu0 %v2941_v27, %s2570_s14  ;;  %1160 = vrot.lane.b32.xlu1 %v2935_v24, %s2575_s25 }
 0x1d8   : > { %1162 = vrot.lane.b32.xlu0 %v2941_v27, %s2575_s25  ;;  %920 = vrot.lane.b32.xlu1 %v2959_v30, %s2571_s16 }
 0x1dc   : > { %922 = vrot.lane.b32.xlu0 %v2965_v32, %s2571_s16  ;;  %1092 = vrot.lane.b32.xlu1 %v2935_v24, %s3560_s18 }
 0x1e0   : > { %1094 = vrot.lane.b32.xlu0 %v2941_v27, %s3560_s18  ;;  %852 = vrot.lane.b32.xlu1 %v2959_v30, %s2568_s28 }
 0x1e4   : > { %854 = vrot.lane.b32.xlu0 %v2965_v32, %s2568_s28  ;;  %784 = vrot.lane.b32.xlu1 %v2959_v30, %s2569_s29  ;;  %s3561_s28 = smov 127  }
 0x1e8   : > { %1090 = vrot.lane.b32.xlu0 %v2893_v7, %s3560_s18  ;;  %716 = vrot.lane.b32.xlu1 %v2959_v30, %s2570_s14 }
 0x1ec   : > { %786 = vrot.lane.b32.xlu0 %v2965_v32, %s2569_s29  ;;  %1168 = vrot.lane.b32.xlu1 %v2959_v30, %s2575_s25  ;;  %s3562_s29 = smov 111  }
 0x1f0   : > { %1098 = vrot.lane.b32.xlu0 %v2917_v17, %s3560_s18  ;;  %1100 = vrot.lane.b32.xlu1 %v2959_v30, %s3560_s18 }
 0x1f4   : > { %718 = vrot.lane.b32.xlu0 %v2965_v32, %s2570_s14  ;;  %1088 = vrot.lane.b32.xlu1 %v2889_v8, %s3560_s18  ;;  %s2496_s14 = sshll.u32 %s2579_s13, 4  ;;  %s2497_s14 = int_to_ptr.vmem [resolvable:$false] %s2496_s14 }
 0x1f5   : > { %s2498_s16 = scalar_lea.vmem %s2497_s14, 256  ;;  %p2499_p11 = scmp.lt.s32.totalorder %s2051_s22, %s2497_s14 }
 0x1f8   : > { %1026 = vrot.lane.b32.xlu0 %v2941_v27, %s3561_s28  ;;  %1096 = vrot.lane.b32.xlu1 %v2911_v15, %s3560_s18 }
 0x1fc   : > { %1170 = vrot.lane.b32.xlu0 %v2965_v32, %s2575_s25  ;;  %1024 = vrot.lane.b32.xlu1 %v2935_v24, %s3561_s28 }
 0x200   : > { %1022 = vrot.lane.b32.xlu0 %v2893_v7, %s3561_s28  ;;  %1032 = vrot.lane.b32.xlu1 %v2959_v30, %s3561_s28 }
 0x204   : > { %1102 = vrot.lane.b32.xlu0 %v2965_v32, %s3560_s18  ;;  %1020 = vrot.lane.b32.xlu1 %v2889_v8, %s3561_s28  ;;  %s3479_s18 = scalar_lea.hbm %s3524_s9, %s2236_s24 }
 0x208   : > { %1030 = vrot.lane.b32.xlu0 %v2917_v17, %s3561_s28  ;;  %1028 = vrot.lane.b32.xlu1 %v2911_v15, %s3561_s28 }
 0x20c   : > { %1034 = vrot.lane.b32.xlu0 %v2965_v32, %s3561_s28  ;;  %1228 = vrot.lane.b32.xlu1 %v2935_v24, %s3562_s29  ;;  %s2037_s28 = scalar_lea.sflag [#allocation5], %s351_s21 }
 0x20e   : > { %v3019_v33 = vpop.permute.xlu1 %908 }
 0x210   : > { %1230 = vrot.lane.b32.xlu0 %v2941_v27, %s3562_s29  ;;  %1236 = vrot.lane.b32.xlu1 %v2959_v30, %s3562_s29 }
 0x212   : > { %v3025_v34 = vpop.permute.xlu0 %910  ;;  %v841_v35 = vpop.permute.xlu1 %840 }
 0x214   : > { %1226 = vrot.lane.b32.xlu0 %v2893_v7, %s3562_s29  ;;  %1224 = vrot.lane.b32.xlu1 %v2889_v8, %s3562_s29 }
 0x216   : > { %v843_v39 = vpop.permute.xlu0 %842  ;;  %v773_v40 = vpop.permute.xlu1 %772 }
 0x218   : > { %1238 = vrot.lane.b32.xlu0 %v2965_v32, %s3562_s29  ;;  %1232 = vrot.lane.b32.xlu1 %v2911_v15, %s3562_s29 }
 0x21a   : > { %v775_v42 = vpop.permute.xlu0 %774  ;;  %v3041_v43 = vpop.permute.xlu1 %704 }
 0x21c   : > { %1234 = vrot.lane.b32.xlu0 %v2917_v17, %s3562_s29  ;;  %1354 = vperm.xlu1 %2422, %v1344_v41   ;;  %s2492_s29 = scalar_lea.vmem %s2051_s22, 128 }
 0x21d   : > { %p2493_p10 = scmp.ne.s32.totalorder %s2051_s22, %s2492_s29  ;;  %p2500_p0 = scmp.lt.s32.totalorder %s2498_s16, %s2492_s29 }
 0x21e   : > { %v3051_v46 = vpop.permute.xlu0 %706  ;;  %v3053_v47 = vpop.permute.xlu1 %1156 }
 0x21f   : > { %p2494_p12 = pnand %p2493_p10, %p2668_p5  ;;  %p2501_p1 = por %p2500_p0, %p2499_p11 }
 0x220   : > { %1359 = vperm.xlu0 %2421, %v1345_v44   ;;  %1364 = vperm.xlu1 %2422, %v1346_v45  }
 0x221   : > { %p2495_p8 = pneg %p2494_p12 }
 0x222   : > { %v3062_v51 = vpop.permute.xlu0 %1158  ;;  %v3064_v52 = vpop.permute.xlu1 %916 }
 0x223   : > { %v928_v56 = vsel %vm418_vm4, %v3064_v52, %v3019_v33  ;;  %v924_v8 = vsel %vm418_vm4, %v3019_v33, %v3064_v52  ;;  %p2502_p3 = pnand %p2501_p1, %p2495_p8 }
 0x224   : > { %1369 = vperm.xlu0 %2421, %v1347_v49   ;;  %1374 = vperm.xlu1 %2422, %v1348_v50   ;;  %v3089_v61 = vmul.f32 %v3069_v53, %v928_v56  ;;  %v1182_v49 = vsub.s32 7, %v2721_v1 }
 0x226   : > { %v3079_v54 = vpop.permute.xlu0 %918  ;;  %v849_v58 = vpop.permute.xlu1 %848 }
 0x227   : > { %v929_v60 = vsel %vm418_vm4, %v3079_v54, %v3025_v34  ;;  %v856_v4 = vsel %vm405_vm1, %v841_v35, %v849_v58  ;;  %v860_v5 = vsel %vm405_vm1, %v849_v58, %v841_v35  ;;  %v3142_v35 = vrot.slane %v2772_v18, %v2724_v2 }
 0x228   : > { %v3092_v62 = vmul.f32 %v3069_v53, %v929_v60  ;;  %1379 = vperm.xlu0 %2421, %v1349_v57   ;;  %1384 = vperm.xlu1 %2422, %v1350_v59   ;;  %v3125_v22 = vmul.f32 %v3095_v63, %v860_v5  ;;  %v3128_v23 = vmul.f32 %v3098_v0, %v856_v4 }
 0x229   : > { %v925_v10 = vsel %vm418_vm4, %v3025_v34, %v3079_v54 }
 0x22a   : > { %v851_v9 = vpop.permute.xlu0 %850  ;;  %v781_v11 = vpop.permute.xlu1 %780 }
 0x22b   : > { %v857_v14 = vsel %vm405_vm1, %v843_v39, %v851_v9  ;;  %v861_v16 = vsel %vm405_vm1, %v851_v9, %v843_v39  ;;  %v788_v29 = vsel %vm390_vm0, %v773_v40, %v781_v11  ;;  %v792_v3 = vsel %vm390_vm0, %v781_v11, %v773_v40 }
 0x22c   : > { %v3131_v26 = vmul.f32 %v3095_v63, %v861_v16  ;;  %v3134_v28 = vmul.f32 %v3098_v0, %v857_v14  ;;  %1389 = vperm.xlu0 %2421, %v1351_v6   ;;  %1961 = vperm.xlu1 %2422, %v1958_v12   ;;  %v3154_v40 = vrot.slane %v2777_v19, %v2724_v2 }
 0x22d   : > { %v3158_v50 = vmul.f32 %v3118_v20, %v792_v3  ;;  %v3161_v55 = vmul.f32 %v3122_v21, %v788_v29  ;;  %v3186_v11 = vrot.slane %v2772_v18, %v1182_v49 }
 0x22e   : > { %v783_v31 = vpop.permute.xlu0 %782  ;;  %v713_v38 = vpop.permute.xlu1 %712 }
 0x22f   : > { %v789_v44 = vsel %vm390_vm0, %v775_v42, %v783_v31  ;;  %v793_v45 = vsel %vm390_vm0, %v783_v31, %v775_v42  ;;  %v720_v42 = vsel %vm381_vm2, %v3041_v43, %v713_v38  ;;  %v724_v58 = vsel %vm381_vm2, %v713_v38, %v3041_v43 }
 0x230   : > { %v3164_v56 = vmul.f32 %v3118_v20, %v793_v45  ;;  %v3167_v57 = vmul.f32 %v3122_v21, %v789_v44  ;;  %v3189_v43 = vrot.slane %v2777_v19, %v1182_v49  ;;  %v3192_v12 = vmul.f32 %v3142_v35, %v724_v58 }
 0x231   : > { %v3195_v14 = vmul.f32 %v3154_v40, %v720_v42 }
 0x232   : > { %v715_v59 = vpop.permute.xlu0 %714  ;;  %v1165_v60 = vpop.permute.xlu1 %1164 }
 0x233   : > { %v721_v6 = vsel %vm381_vm2, %v3051_v46, %v715_v59  ;;  %v725_v9 = vsel %vm381_vm2, %v715_v59, %v3051_v46  ;;  %v1172_v46 = vsel %vm474_vm10, %v3053_v47, %v1165_v60  ;;  %v1176_v3 = vsel %vm474_vm10, %v1165_v60, %v3053_v47 }
 0x234   : > { %v3198_v16 = vmul.f32 %v3142_v35, %v725_v9  ;;  %v3201_v29 = vmul.f32 %v3154_v40, %v721_v6  ;;  %v3220_v58 = vmul.f32 %v3186_v11, %v1172_v46  ;;  %v3223_v47 = vmul.f32 %v3189_v43, %v1176_v3 }
 0x236   : > { %v1167_v31 = vpop.permute.xlu0 %1166  ;;  %v913_v38 = vpop.permute.xlu1 %912 }
 0x237   : > { %v1173_v49 = vsel %vm474_vm10, %v3062_v51, %v1167_v31  ;;  %v1177_v42 = vsel %vm474_vm10, %v1167_v31, %v3062_v51  ;;  %v939_v51 = vrot.slane %v2777_v19, %v934_v48 }
 0x238   : > { %v3226_v59 = vmul.f32 %v3186_v11, %v1173_v49  ;;  %v3229_v60 = vmul.f32 %v3189_v43, %v1177_v42 }
 0x239   : > { %v943_v7 = vmul.f32 %v939_v51, %v925_v10  ;;  %v941_v24 = vmul.f32 %v939_v51, %v924_v8 }
 0x23a   : > { %v915_v6 = vpop.permute.xlu0 %914  ;;  %v845_v9 = vpop.permute.xlu1 %844 }
 0x23b   : > { %v2288_v10 = vpack.c.bf16 %v943_v7, %v941_v24 }
 0x23e   : > { %v847_v31 = vpop.permute.xlu0 %846  ;;  %v777_v46 = vpop.permute.xlu1 %776 }
 0x242   : > { %v779_v45 = vpop.permute.xlu0 %778  ;;  %v3235_v44 = vpop.permute.xlu1 %708 }
 0x246   : > { %v3237_v3 = vpop.permute.xlu0 %710  ;;  %v3239_v49 = vpop.permute.xlu1 %1160 }
 0x24a   : > { %v3241_v5 = vpop.permute.xlu0 %1162  ;;  %v921_v42 = vpop.permute.xlu1 %920 }
 0x24b   : > { %v926_v4 = vsel %vm418_vm4, %v913_v38, %v921_v42  ;;  %v930_v41 = vsel %vm418_vm4, %v921_v42, %v913_v38 }
 0x24c   : > { %v944_v54 = vmul.f32 %v3069_v53, %v930_v41  ;;  %v945_v38 = vmul.f32 %v939_v51, %v926_v4 }
 0x24e   : > { %v923_v39 = vpop.permute.xlu0 %922  ;;  %v3254_v13 = vpop.permute.xlu1 %1092 }
 0x24f   : > { %v927_v34 = vsel %vm418_vm4, %v915_v6, %v923_v39  ;;  %v931_v48 = vsel %vm418_vm4, %v923_v39, %v915_v6 }
 0x250   : > { %v946_v15 = vmul.f32 %v3069_v53, %v931_v48  ;;  %v947_v42 = vmul.f32 %v939_v51, %v927_v34 }
 0x252   : > { %v3266_v37 = vpop.permute.xlu0 %1094  ;;  %v853_v36 = vpop.permute.xlu1 %852  ;;  %v2290_v2 = vpack.c.bf16 %v947_v42, %v945_v38  ;;  %v2289_v17 = vpack.c.bf16 %v946_v15, %v944_v54  ;;  %v3565_v42 = vpack.c.bf16 %v3131_v26, %v3125_v22 }
 0x253   : > { %v858_v33 = vsel %vm405_vm1, %v845_v9, %v853_v36  ;;  %v862_v52 = vsel %vm405_vm1, %v853_v36, %v845_v9  ;;  %v3563_v36 = vpack.c.bf16 %v3092_v62, %v3089_v61 }
 0x254   : > { %1645 = vmatprep.subr.bf16.mxu1 %v2290_v2  ;;  %v876_v15 = vmul.f32 %v3095_v63, %v862_v52  ;;  %v877_v2 = vmul.f32 %v3098_v0, %v858_v33 }
 0x255   : > { %1646 = vmatpush1.bf16.msra.mxu1 %v2289_v17 }
 0x256   : > { %v855_v39 = vpop.permute.xlu0 %854  ;;  %1647 = vmatprep.subr.bf16.mxu1 %v2288_v10  ;;  %v785_v53 = vpop.permute.xlu1 %784 }
 0x257   : > { %v859_v8 = vsel %vm405_vm1, %v847_v31, %v855_v39  ;;  %v863_v41 = vsel %vm405_vm1, %v855_v39, %v847_v31  ;;  %v790_v51 = vsel %vm390_vm0, %v777_v46, %v785_v53  ;;  %v794_v31 = vsel %vm390_vm0, %v785_v53, %v777_v46 }
 0x258   : > { %v878_v7 = vmul.f32 %v3095_v63, %v863_v41  ;;  %v879_v24 = vmul.f32 %v3098_v0, %v859_v8  ;;  %v3564_v0 = vpack.c.bf16 %v3134_v28, %v3128_v23  ;;  %v808_v48 = vmul.f32 %v3118_v20, %v794_v31 }
 0x259   : > { %1648 = vmatpush1.bf16.msra.mxu1 %v3563_v36  ;;  %v809_v54 = vmul.f32 %v3122_v21, %v790_v51 }
 0x25a   : > { %v3283_v17 = vpop.permute.xlu0 %1090  ;;  %v717_v4 = vpop.permute.xlu1 %716  ;;  %v2286_v6 = vpack.c.bf16 %v879_v24, %v877_v2  ;;  %v2285_v9 = vpack.c.bf16 %v878_v7, %v876_v15  ;;  %v1114_v24 = vsub.s32 6, %v2721_v1 }
 0x25b   : > { %v726_v52 = vsel %vm381_vm2, %v717_v4, %v3235_v44 }
 0x25c   : > { %1649 = vmatprep.subr.bf16.mxu1 %v2286_v6  ;;  %v740_v53 = vmul.f32 %v3142_v35, %v726_v52 }
 0x25d   : > { %1650 = vmatpush1.bf16.msra.mxu1 %v2285_v9 }
 0x25e   : > { %v787_v63 = vpop.permute.xlu0 %786  ;;  %1651 = vmatprep.subr.bf16.mxu1 %v3564_v0  ;;  %v1169_v61 = vpop.permute.xlu1 %1168 }
 0x25f   : > { %v791_v62 = vsel %vm390_vm0, %v779_v45, %v787_v63  ;;  %v795_v34 = vsel %vm390_vm0, %v787_v63, %v779_v45  ;;  %v722_v45 = vsel %vm381_vm2, %v3235_v44, %v717_v4  ;;  %vm1632_vm0 = vcmask 261120  }
 0x260   : > { %v810_v38 = vmul.f32 %v3118_v20, %v795_v34  ;;  %v811_v46 = vmul.f32 %v3122_v21, %v791_v62  ;;  %v3566_v21 = vpack.c.bf16 %v3167_v57, %v3161_v55  ;;  %v741_v8 = vmul.f32 %v3154_v40, %v722_v45 }
 0x261   : > { %1652 = vmatpush1.bf16.msra.mxu1 %v3565_v42  ;;  %v3567_v55 = vpack.c.bf16 %v3164_v56, %v3158_v50  ;;  %v3568_v50 = vpack.c.bf16 %v3201_v29, %v3195_v14  ;;  %v3569_v29 = vpack.c.bf16 %v3198_v16, %v3192_v12  ;;  %v1046_v12 = vsub.s32 5, %v2721_v1 }
 0x262   : > { %v1099_v23 = vpop.permute.xlu0 %1098  ;;  %v1101_v28 = vpop.permute.xlu1 %1100  ;;  %v2282_v10 = vpack.c.bf16 %v811_v46, %v809_v54  ;;  %v2281_v33 = vpack.c.bf16 %v810_v38, %v808_v48  ;;  %v3570_v48 = vpack.c.bf16 %v3229_v60, %v3223_v47 }
 0x263   : > { %v1106_v62 = vsel %vm461_vm8, %v3254_v13, %v1101_v28  ;;  %v1109_v16 = vsel %vm461_vm8, %v1099_v23, %v3283_v17  ;;  %v1105_v47 = vsel %vm461_vm8, %v3283_v17, %v1099_v23  ;;  %v1047_v60 = vrot.slane %v2772_v18, %v1046_v12 }
 0x264   : > { %1653 = vmatprep.subr.bf16.mxu1 %v2282_v10  ;;  %v1051_v52 = vrot.slane %v2777_v19, %v1046_v12  ;;  %v3572_v12 = vld [vmem:[#allocation19_spill] sm:$0xff] }
 0x265   : > { %1654 = vmatpush1.bf16.msra.mxu1 %v2281_v33 }
 0x266   : > { %v719_v20 = vpop.permute.xlu0 %718  ;;  %1655 = vmatprep.subr.bf16.mxu1 %v3566_v21  ;;  %v1089_v22 = vpop.permute.xlu1 %1088 }
 0x267   : > { %v723_v26 = vsel %vm381_vm2, %v3237_v3, %v719_v20  ;;  %v727_v39 = vsel %vm381_vm2, %v719_v20, %v3237_v3  ;;  %v1174_v3 = vsel %vm474_vm10, %v3239_v49, %v1169_v61  ;;  %v3571_v20 = vpack.c.bf16 %v3226_v59, %v3220_v58 }
 0x268   : > { %v742_v44 = vmul.f32 %v3142_v35, %v727_v39  ;;  %v743_v41 = vmul.f32 %v3154_v40, %v723_v26  ;;  %v1178_v35 = vsel %vm474_vm10, %v1169_v61, %v3239_v49  ;;  %v1192_v6 = vmul.f32 %v3186_v11, %v1174_v3 }
 0x269   : > { %1656 = vmatpush1.bf16.msra.mxu1 %v3567_v55  ;;  %v1193_v49 = vmul.f32 %v3189_v43, %v1178_v35  ;;  %v1115_v61 = vrot.slane %v2772_v18, %v1114_v24  ;;  %v978_v3 = vsub.s32 4, %v2721_v1 }
 0x26a   : > { %v3325_v57 = vpop.permute.xlu0 %1026  ;;  %v1097_v15 = vpop.permute.xlu1 %1096  ;;  %v2278_v2 = vpack.c.bf16 %v743_v41, %v741_v8  ;;  %v2277_v7 = vpack.c.bf16 %v742_v44, %v740_v53 }
 0x26b   : > { %v1124_v38 = vmul.f32 %v1115_v61, %v1106_v62  ;;  %v1122_v23 = vmul.f32 %v1115_v61, %v1105_v47 }
 0x26c   : > { %1657 = vmatprep.subr.bf16.mxu1 %v2278_v2 }
 0x26d   : > { %1658 = vmatpush1.bf16.msra.mxu1 %v2277_v7 }
 0x26e   : > { %v1171_v40 = vpop.permute.xlu0 %1170  ;;  %1659 = vmatprep.subr.bf16.mxu1 %v3568_v50  ;;  %v1025_v56 = vpop.permute.xlu1 %1024 }
 0x26f   : > { %v1175_v36 = vsel %vm474_vm10, %v3241_v5, %v1171_v40  ;;  %v1179_v4 = vsel %vm474_vm10, %v1171_v40, %v3241_v5  ;;  %v1119_v5 = vrot.slane %v2777_v19, %v1114_v24 }
 0x270   : > { %v1194_v9 = vmul.f32 %v3186_v11, %v1175_v36  ;;  %v1195_v14 = vmul.f32 %v3189_v43, %v1179_v4  ;;  %v1110_v11 = vsel %vm461_vm8, %v1101_v28, %v3254_v13  ;;  %v1108_v43 = vsel %vm461_vm8, %v1097_v15, %v1089_v22 }
 0x271   : > { %1660 = vmatpush1.bf16.msra.mxu1 %v3569_v29  ;;  %v1104_v13 = vsel %vm461_vm8, %v1089_v22, %v1097_v15  ;;  %v1125_v28 = vmul.f32 %v1119_v5, %v1110_v11  ;;  %v1121_v10 = vmul.f32 %v1119_v5, %v1108_v43  ;;  %v1123_v21 = vmul.f32 %v1119_v5, %v1109_v16 }
 0x272   : > { %v1023_v51 = vpop.permute.xlu0 %1022  ;;  %v1033_v31 = vpop.permute.xlu1 %1032  ;;  %v2306_v63 = vpack.c.bf16 %v1195_v14, %v1193_v49  ;;  %v2305_v0 = vpack.c.bf16 %v1194_v9, %v1192_v6  ;;  %v1120_v22 = vmul.f32 %v1115_v61, %v1104_v13  ;;  %v983_v29 = vrot.slane %v2777_v19, %v978_v3  ;;  %v3573_v19 = vld [vmem:[#allocation13_spill] sm:$0xff] }
 0x273   : > { %v1038_v8 = vsel %vm448_vm6, %v1025_v56, %v1033_v31  ;;  %v1042_v17 = vsel %vm448_vm6, %v1033_v31, %v1025_v56  ;;  %v2300_v44 = vpack.c.bf16 %v1123_v21, %v1121_v10 }
 0x274   : > { %1661 = vmatprep.subr.bf16.mxu1 %v2306_v63  ;;  %v1056_v59 = vmul.f32 %v1047_v60, %v1038_v8  ;;  %v1057_v55 = vmul.f32 %v1051_v52, %v1042_v17  ;;  %v2299_v7 = vpack.c.bf16 %v1122_v23, %v1120_v22  ;;  %v989_v62 = vmul.f32 %v983_v29, %v2959_v30  ;;  %v3576_v30 = vld [vmem:[#allocation20_spill] sm:$0xff] }
 0x275   : > { %1662 = vmatpush2.bf16.msra.mxu1 %v2305_v0  ;;  %v991_v0 = vmul.f32 %v983_v29, %v2965_v32  ;;  %v987_v16 = vmul.f32 %v983_v29, %v3572_v12  ;;  %v3579_v8 = vld [vmem:[#allocation16_spill] sm:$0xff]  ;;  %v1952_v12 = vld [vmem:[#allocation6 + $0xd0] sm:$0xff] }
 0x276   : > { %v1103_v34 = vpop.permute.xlu0 %1102  ;;  %1663 = vmatprep.subr.bf16.mxu1 %v3570_v48  ;;  %v1021_v54 = vpop.permute.xlu1 %1020 }
 0x277   : > { %v1107_v46 = vsel %vm461_vm8, %v3266_v37, %v1103_v34  ;;  %v1111_v42 = vsel %vm461_vm8, %v1103_v34, %v3266_v37  ;;  %v3574_v34 = vld [vmem:[#allocation14_spill] sm:$0xff]  ;;  %v2294_v32 = vpack.c.bf16 %v991_v0, %v989_v62  ;;  %v1940_v0 = vld [vmem:[#allocation6 + $0x70] sm:$0xff]  ;;  %v1938_v62 = vld [vmem:[#allocation6 + $0x60] sm:$0xff] }
 0x278   : > { %v1126_v33 = vmul.f32 %v1115_v61, %v1107_v46  ;;  %v1127_v45 = vmul.f32 %v1119_v5, %v1111_v42  ;;  %v1251_v48 = vrot.slane %v3574_v34, %v3573_v19  ;;  %v3577_v42 = vld [vmem:[#allocation18_spill] sm:$0xff]  ;;  %v1935_v34 = vld [vmem:[#allocation6 + $0x48] sm:$0xff] }
 0x279   : > { %1664 = vmatpush2.bf16.msra.mxu1 %v3571_v20 }
 0x27a   : > { %v1031_v26 = vpop.permute.xlu0 %1030  ;;  %v1029_v37 = vpop.permute.xlu1 %1028  ;;  %v2302_v39 = vpack.c.bf16 %v1127_v45, %v1125_v28  ;;  %v2301_v53 = vpack.c.bf16 %v1126_v33, %v1124_v38  ;;  %v3578_v33 = vld [vmem:[#allocation17_spill] sm:$0xff] }
 0x27b   : > { %v1041_v41 = vsel %vm448_vm6, %v1031_v26, %v1023_v51  ;;  %v1040_v58 = vsel %vm448_vm6, %v1029_v37, %v1021_v54  ;;  %v1037_v35 = vsel %vm448_vm6, %v1023_v51, %v1031_v26  ;;  %v1036_v40 = vsel %vm448_vm6, %v1021_v54, %v1029_v37  ;;  %v3575_v54 = vld [vmem:[#allocation15_spill] sm:$0xff] }
 0x27c   : > { %1665 = vmatprep.subr.bf16.mxu1 %v2302_v39  ;;  %v1055_v24 = vmul.f32 %v1051_v52, %v1041_v41  ;;  %v1053_v36 = vmul.f32 %v1051_v52, %v1040_v58  ;;  %v1054_v51 = vmul.f32 %v1047_v60, %v1037_v35  ;;  %v1052_v31 = vmul.f32 %v1047_v60, %v1036_v40  ;;  %v2424_v35 = vld [vmem:[%s3519_s4] ss:$12 sps:$4 sm:$0xff]   ;;  %v2428_v40 = vld [vmem:[%s3519_s4 + $0x1c] ss:$12 sps:$4 sm:$0xff]  }
 0x27d   : > { %1666 = vmatpush2.bf16.msra.mxu1 %v2301_v53  ;;  %v1255_v38 = vrot.slane %v3575_v54, %v3573_v19  ;;  %v1951_v19 = vld [vmem:[#allocation6 + $0xc8] sm:$0xff]  ;;  %v1934_v54 = vld [vmem:[#allocation6 + $0x40] sm:$0xff] }
 0x27e   : > { %v1035_v15 = vpop.permute.xlu0 %1034  ;;  %1667 = vmatprep.subr.bf16.mxu1 %v2300_v44  ;;  %v1229_v2 = vpop.permute.xlu1 %1228  ;;  %v2296_v63 = vpack.c.bf16 %v1055_v24, %v1053_v36  ;;  %v2295_v11 = vpack.c.bf16 %v1054_v51, %v1052_v31  ;;  %v2430_v24 = vld [vmem:[%s3519_s4 + $0x18] ss:$12 sps:$4 sm:$0xff]   ;;  %v3580_v36 = vmov 0  }
 0x27f   : > { %v1039_v50 = vsel %vm448_vm6, %v3325_v57, %v1035_v15  ;;  %v1043_v56 = vsel %vm448_vm6, %v1035_v15, %v3325_v57  ;;  %v979_v57 = vrot.slane %v2772_v18, %v978_v3  ;;  %v1957_v51 = vld [vmem:[#allocation6 + $0xf8] sm:$0xff] }
 0x280   : > { %v1058_v4 = vmul.f32 %v1047_v60, %v1039_v50  ;;  %v1059_v6 = vmul.f32 %v1051_v52, %v1043_v56  ;;  %v1941_v31 = vld [vmem:[#allocation6 + $0x78] sm:$0xff] }
 0x281   : > { %1668 = vmatpush2.bf16.msra.mxu1 %v2299_v7  ;;  %v990_v43 = vmul.f32 %v979_v57, %v2941_v27  ;;  %v988_v46 = vmul.f32 %v979_v57, %v3576_v30  ;;  %v985_v27 = vmul.f32 %v983_v29, %v3577_v42  ;;  %v986_v45 = vmul.f32 %v979_v57, %v3578_v33  ;;  %v2439_v29 = vld [vmem:[%s3519_s4 + $0x50] ss:$12 sps:$4 sm:$0xff]   ;;  %v1947_v30 = vld [vmem:[#allocation6 + $0xa8] sm:$0xff]  ;;  %v1946_v42 = vld [vmem:[#allocation6 + $0xa0] sm:$0xff] }
 0x282   : > { %v1231_v1 = vpop.permute.xlu0 %1230  ;;  %v1237_v49 = vpop.permute.xlu1 %1236  ;;  %v2298_v9 = vpack.c.bf16 %v1059_v6, %v1057_v55  ;;  %v2297_v14 = vpack.c.bf16 %v1058_v4, %v1056_v59  ;;  %v984_v17 = vmul.f32 %v979_v57, %v3579_v8  ;;  %v2432_v4 = vld [vmem:[%s3519_s4 + $0x34] ss:$12 sps:$4 sm:$0xff]   ;;  %v1955_v57 = vld [vmem:[#allocation6 + $0xe8] sm:$0xff] }
 0x283   : > { %v1242_v18 = vsel %vm487_vm12, %v1229_v2, %v1237_v49  ;;  %v1246_v13 = vsel %vm487_vm12, %v1237_v49, %v1229_v2  ;;  %v2293_v52 = vpack.c.bf16 %v990_v43, %v988_v46  ;;  %v2292_v20 = vpack.c.bf16 %v987_v16, %v985_v27  ;;  %v2431_v6 = vld [vmem:[%s3519_s4 + $0x20] ss:$12 sps:$4 sm:$0xff]   ;;  %v1937_v43 = vld [vmem:[#allocation6 + $0x58] sm:$0xff]  ;;  %v1936_v16 = vld [vmem:[#allocation6 + $0x50] sm:$0xff] }
 0x284   : > { %1669 = vmatprep.subr.bf16.mxu1 %v2298_v9  ;;  %v1260_v21 = vmul.f32 %v1251_v48, %v1242_v18  ;;  %v1261_v22 = vmul.f32 %v1255_v38, %v1246_v13  ;;  %v2291_v55 = vpack.c.bf16 %v986_v45, %v984_v17  ;;  %v2436_v49 = vld [vmem:[%s3519_s4 + $0x4c] ss:$12 sps:$4 sm:$0xff]   ;;  %v1948_v18 = vld [vmem:[#allocation6 + $0xb0] sm:$0xff]  ;;  %v1930_v27 = vld [vmem:[#allocation6 + $0x20] sm:$0xff] }
 0x285   : > { %1670 = vmatpush2.bf16.msra.mxu1 %v2297_v14  ;;  %v2435_v9 = vld [vmem:[%s3519_s4 + $0x38] ss:$12 sps:$4 sm:$0xff]   ;;  %v2438_v14 = vld [vmem:[%s3519_s4 + $0x48] ss:$12 sps:$4 sm:$0xff]  }
 0x286   : > { %v1227_v61 = vpop.permute.xlu0 %1226  ;;  %1671 = vmatprep.subr.bf16.mxu1 %v2296_v63  ;;  %v1225_v5 = vpop.permute.xlu1 %1224  ;;  %v1956_v63 = vld [vmem:[#allocation6 + $0xf0] sm:$0xff]  ;;  %v1931_v46 = vld [vmem:[#allocation6 + $0x28] sm:$0xff] }
 0x287   : > { %v1932_v13 = vld [vmem:[#allocation6 + $0x30] sm:$0xff] }
 0x288   : > { %v1944_v33 = vld [vmem:[#allocation6 + $0x90] sm:$0xff] }
 0x289   : > { %1672 = vmatpush2.bf16.msra.mxu1 %v2295_v11  ;;  %v1953_v11 = vld [vmem:[#allocation6 + $0xd8] sm:$0xff]  ;;  %v1928_v45 = vld [vmem:[#allocation6 + $0x10] sm:$0xff] }
 0x28a   : > { %v1239_v28 = vpop.permute.xlu0 %1238  ;;  %1673 = vmatprep.subr.bf16.mxu1 %v2294_v32  ;;  %v1233_v10 = vpop.permute.xlu1 %1232  ;;  %v1933_v32 = vld [vmem:[#allocation6 + $0x38] sm:$0xff] }
 0x28b   : > { %v1243_v47 = vsel %vm487_vm12, %v1231_v1, %v1239_v28  ;;  %v1247_v60 = vsel %vm487_vm12, %v1239_v28, %v1231_v1  ;;  %v1240_v39 = vsel %vm487_vm12, %v1225_v5, %v1233_v10  ;;  %v1244_v53 = vsel %vm487_vm12, %v1233_v10, %v1225_v5  ;;  %v2434_v1 = vld [vmem:[%s3519_s4 + $0x30] ss:$12 sps:$4 sm:$0xff]   ;;  %v1954_v5 = vld [vmem:[#allocation6 + $0xe0] sm:$0xff] }
 0x28c   : > { %v1262_v26 = vmul.f32 %v1251_v48, %v1243_v47  ;;  %v1263_v37 = vmul.f32 %v1255_v38, %v1247_v60  ;;  %v1256_v15 = vmul.f32 %v1251_v48, %v1240_v39  ;;  %v1257_v2 = vmul.f32 %v1255_v38, %v1244_v53  ;;  %v1945_v28 = vld [vmem:[#allocation6 + $0x98] sm:$0xff]  ;;  %v1943_v47 = vld [vmem:[#allocation6 + $0x88] sm:$0xff] }
 0x28d   : > { %1674 = vmatpush2.bf16.msra.mxu1 %v2293_v52  ;;  %v1929_v10 = vld [vmem:[#allocation6 + $0x18] sm:$0xff]  ;;  %v1927_v60 = vld [vmem:[#allocation6 + $0x8] sm:$0xff]  ;;  %v1942_v52 = vld [vmem:[#allocation6 + $0x80] sm:$0xff] }
 0x28e   : > { %v2309_v23 = vpack.c.bf16 %v1262_v26, %v1260_v21  ;;  %v1235_v44 = vpop.permute.xlu0 %1234  ;;  %1675 = vmatprep.subr.bf16.mxu1 %v2292_v20  ;;  %v2310_v41 = vpack.c.bf16 %v1263_v37, %v1261_v22  ;;  %v1926_v20 = vld [vmem:[#allocation6] sm:$0xff] }
 0x28f   : > { %v1241_v58 = vsel %vm487_vm12, %v1227_v61, %v1235_v44  ;;  %v1245_v59 = vsel %vm487_vm12, %v1235_v44, %v1227_v61  ;;  %v1939_v61 = vld [vmem:[#allocation6 + $0x68] sm:$0xff] }
 0x290   : > { %v1258_v7 = vmul.f32 %v1251_v48, %v1241_v58  ;;  %v1259_v3 = vmul.f32 %v1255_v38, %v1245_v59  ;;  %1730 = vmatprep.subr.bf16.mxu0 %v2310_v41  ;;  %v1950_v48 = vld [vmem:[#allocation6 + $0xc0] sm:$0xff]  ;;  %v1949_v38 = vld [vmem:[#allocation6 + $0xb8] sm:$0xff] }
 0x291   : > { %1676 = vmatpush2.bf16.msra.mxu1 %v2291_v55  ;;  %1731 = vmatpush1.bf16.msra.mxu0 %v2309_v23 }
 0x292   : > { %v2307_v50 = vpack.c.bf16 %v1258_v7, %v1256_v15  ;;  %v2308_v56 = vpack.c.bf16 %v1259_v3, %v1257_v2 }
 0x294   : > { %1678 = vmatmul.mubr.bf16.vlgmr.msra.gmra.mxu1 %v2424_v35  ;;  %1732 = vmatprep.subr.bf16.mxu0 %v2308_v56 }
 0x295   : > { %1733 = vmatpush1.bf16.msra.mxu0 %v2307_v50  ;;  %1687 = vmatprep.mubr.bf16.mxu1 %v2428_v40 }
 0x296   : > { %2311 = vmatprep.subr.mxu0 %v1957_v51 }
 0x297   : > { %v1355_v26 = vpop.permute.xlu1 %1354 }
 0x298   : > { %2231 = vmatmul.mubr.msk.bf16.vlgmr.msra.gmra.mxu0 %vm1632_vm0, %v2427_v25 }
 0x299   : > { %1760 = vmatprep.mubr.bf16.mxu0 %v3580_v36  ;;  %2312 = vmatpush3.msra.mxu0 %v1941_v31 }
 0x29a   : > { %2313 = vmatprep.subr.mxu0 %v1956_v63 }
 0x29b   : > { %2314 = vmatpush3.msra.mxu0 %v1940_v0  ;;  %v1360_v17 = vpop.permute.xlu0 %1359  ;;  %v1365_v58 = vpop.permute.xlu1 %1364  ;;  %v1810_v0 = vld [vmem:[#allocation3 + $0x18] sm:$0xff] }
 0x29c   : > { %1688 = vmatmul.mubr.bf16.gmra.mxu1 %v2430_v24  ;;  %2315 = vmatprep.subr.mxu0 %v1955_v57 }
 0x29d   : > { %1697 = vmatprep.mubr.bf16.mxu1 %v2432_v4  ;;  %2316 = vmatpush3.msra.mxu0 %v1939_v61 }
 0x29e   : > { %2317 = vmatprep.subr.mxu0 %v1954_v5 }
 0x29f   : > { %2318 = vmatpush3.msra.mxu0 %v1938_v62 }
 0x2a0   : > { %2232 = vmatmul.mubr.msk.bf16.gmra.mxu0 %vm1632_vm0, %v2431_v6  ;;  %2319 = vmatprep.subr.mxu0 %v1953_v11  ;;  %v1375_v11 = vpop.permute.xlu1 %1374 }
 0x2a1   : > { %1770 = vmatprep.mubr.bf16.mxu0 %v3580_v36  ;;  %2320 = vmatpush3.msra.mxu0 %v1937_v43  ;;  %v1807_v43 = vld [vmem:[#allocation3] sm:$0xff] }
 0x2a2   : > { %2321 = vmatprep.subr.mxu0 %v1952_v12  ;;  %v1866_v12 = vld [vmem:[#allocation3 + $0x80] sm:$0xff] }
 0x2a3   : > { %2322 = vmatpush3.msra.mxu0 %v1936_v16  ;;  %v1808_v16 = vld [vmem:[#allocation3 + $0x8] sm:$0xff] }
 0x2a4   : > { %1698 = vmatmul.mubr.bf16.gmra.mxu1 %v2434_v1  ;;  %2323 = vmatprep.subr.mxu0 %v1951_v19 }
 0x2a5   : > { %1707 = vmatprep.mubr.bf16.mxu1 %v2436_v49  ;;  %2324 = vmatpush3.msra.mxu0 %v1935_v34 }
 0x2a6   : > { %2325 = vmatprep.subr.mxu0 %v1950_v48 }
 0x2a7   : > { %2326 = vmatpush3.msra.mxu0 %v1934_v54 }
 0x2a8   : > { %2233 = vmatmul.mubr.msk.bf16.gmra.mxu0 %vm1632_vm0, %v2435_v9  ;;  %2327 = vmatprep.subr.mxu0 %v1949_v38  ;;  %v1370_v9 = vpop.permute.xlu0 %1369  ;;  %v1869_v38 = vld [vmem:[#allocation3 + $0x98] sm:$0xff] }
 0x2a9   : > { %1780 = vmatprep.mubr.bf16.mxu0 %v3580_v36  ;;  %2328 = vmatpush3.msra.mxu0 %v1933_v32  ;;  %v1811_v32 = vld [vmem:[#allocation3 + $0x20] sm:$0xff] }
 0x2aa   : > { %2329 = vmatprep.subr.mxu0 %v1948_v18 }
 0x2ab   : > { %2330 = vmatpush3.msra.mxu0 %v1932_v13 }
 0x2ac   : > { %1708 = vmatmul.mubr.bf16.gmra.mxu1 %v2438_v14  ;;  %2331 = vmatprep.subr.mxu0 %v1947_v30  ;;  %v1809_v14 = vld [vmem:[#allocation3 + $0x10] sm:$0xff] }
 0x2ad   : > { %2332 = vmatpush3.msra.mxu0 %v1931_v46  ;;  %v1867_v46 = vld [vmem:[#allocation3 + $0x88] sm:$0xff] }
 0x2ae   : > { %2333 = vmatprep.subr.mxu0 %v1946_v42 }
 0x2af   : > { %2334 = vmatpush3.msra.mxu0 %v1930_v27 }
 0x2b0   : > { %2234 = vmatmul.mubr.msk.bf16.gmra.mxu0 %vm1632_vm0, %v2439_v29  ;;  %2335 = vmatprep.subr.mxu0 %v1945_v28  ;;  %v1868_v29 = vld [vmem:[#allocation3 + $0x90] sm:$0xff] }
 0x2b1   : > { %2336 = vmatpush3.msra.mxu0 %v1929_v10 }
 0x2b2   : > { %2337 = vmatprep.subr.mxu0 %v1944_v33 }
 0x2b3   : > { %2338 = vmatpush3.msra.mxu0 %v1928_v45 }
 0x2b4   : > { %2339 = vmatprep.subr.mxu0 %v1943_v47 }
 0x2b5   : > { %2340 = vmatpush3.msra.mxu0 %v1927_v60  ;;  %v1870_v60 = vld [vmem:[#allocation3 + $0xa0] sm:$0xff] }
 0x2b6   : > { %2341 = vmatprep.subr.mxu0 %v1942_v52  ;;  %v1812_v52 = vld [vmem:[#allocation3 + $0x28] sm:$0xff] }
 0x2b7   : > { %2342 = vmatpush3.msra.mxu0 %v1926_v20 }
 0x354   : > { %v1679_v21 = vpop.f32.mrf.mxu1 }
 0x355   : > { %v1680_v55 = vadd.f32 %v1679_v21, %v1355_v26 }
 0x356   : > { %v1681_v22 = vpop.f32.mrf.mxu1 }
 0x357   : > { %v1682_v15 = vadd.f32 %v1681_v22, %v1355_v26 }
 0x358   : > { %v1683_v37 = vpop.f32.mrf.mxu1  ;;  %v1752_v39 = vpop.f32.mrf.mxu0 }
 0x359   : > { %v1684_v23 = vadd.f32 %v1683_v37, %v1360_v17  ;;  %v1753_v50 = vadd.f32 %v1752_v39, %v1680_v55  ;;  %v1871_v37 = vld [vmem:[#allocation3 + $0xa8] sm:$0xff]  ;;  %v1380_v55 = vpop.permute.xlu0 %1379 }
 0x35a   : > { %v1685_v53 = vpop.f32.mrf.mxu1  ;;  %v1754_v8 = vpop.f32.mrf.mxu0 }
 0x35b   : > { %v1686_v59 = vadd.f32 %v1685_v53, %v1360_v17  ;;  %v1755_v56 = vadd.f32 %v1754_v8, %v1682_v15  ;;  %v1791_v31 = vmax.f32 %v1753_v50, 0.0  ;;  %v1873_v50 = vld [vmem:[#allocation3 + $0xb8] sm:$0xff] }
 0x35c   : > { %v1689_v44 = vpop.f32.mrf.mxu1  ;;  %v1756_v41 = vpop.f32.mrf.mxu0 }
 0x35d   : > { %v1757_v2 = vadd.f32 %v1756_v41, %v1684_v23  ;;  %v1690_v35 = vadd.f32 %v1689_v44, %v1365_v58  ;;  %v1792_v63 = vmax.f32 %v1755_v56, 0.0  ;;  %v1823_v33 = vmul.f32 %v1807_v43, %v1791_v31  ;;  %v1813_v23 = vld [vmem:[#allocation3 + $0x30] sm:$0xff] }
 0x35e   : > { %v1691_v7 = vpop.f32.mrf.mxu1  ;;  %v1758_v3 = vpop.f32.mrf.mxu0  ;;  %v1882_v45 = vmul.f32 %v1866_v12, %v1791_v31 }
 0x35f   : > { %v1759_v40 = vadd.f32 %v1758_v3, %v1686_v59  ;;  %v1793_v4 = vmax.f32 %v1757_v2, 0.0  ;;  %v1692_v6 = vadd.f32 %v1691_v7, %v1365_v58  ;;  %v1824_v47 = vmul.f32 %v1808_v16, %v1792_v63 }
 0x360   : > { %v1693_v25 = vpop.f32.mrf.mxu1  ;;  %v1762_v24 = vpop.f32.mrf.mxu0  ;;  %v1883_v8 = vmul.f32 %v1867_v46, %v1792_v63 }
 0x361   : > { %v1763_v36 = vadd.f32 %v1762_v24, %v1690_v35  ;;  %v1794_v51 = vmax.f32 %v1759_v40, 0.0  ;;  %v1694_v57 = vadd.f32 %v1693_v25, %v1370_v9  ;;  %v1825_v48 = vmul.f32 %v1809_v14, %v1793_v4  ;;  %v1872_v35 = vld [vmem:[#allocation3 + $0xb0] sm:$0xff]  ;;  %v1814_v40 = vld [vmem:[#allocation3 + $0x38] sm:$0xff] }
 0x362   : > { %v1695_v1 = vpop.f32.mrf.mxu1  ;;  %v1764_v49 = vpop.f32.mrf.mxu0  ;;  %v1884_v54 = vmul.f32 %v1868_v29, %v1793_v4  ;;  %v1815_v29 = vld [vmem:[#allocation3 + $0x40] sm:$0xff] }
 0x363   : > { %v1765_v61 = vadd.f32 %v1764_v49, %v1692_v6  ;;  %v1795_v19 = vmax.f32 %v1763_v36, 0.0  ;;  %v1696_v34 = vadd.f32 %v1695_v1, %v1370_v9  ;;  %v1826_v42 = vmul.f32 %v1810_v0, %v1794_v51  ;;  %v1385_v1 = vpop.permute.xlu1 %1384 }
 0x364   : > { %v1699_v5 = vpop.f32.mrf.mxu1  ;;  %v1766_v62 = vpop.f32.mrf.mxu0  ;;  %v1885_v22 = vmul.f32 %v1869_v38, %v1794_v51  ;;  %v1839_v17 = vadd.f32 %v1825_v48, %v1823_v33  ;;  %v1898_v15 = vadd.f32 %v1884_v54, %v1882_v45  ;;  %v1816_v54 = vld [vmem:[#allocation3 + $0x48] sm:$0xff] }
 0x365   : > { %v1767_v18 = vadd.f32 %v1766_v62, %v1694_v57  ;;  %v1796_v27 = vmax.f32 %v1765_v61, 0.0  ;;  %v1700_v28 = vadd.f32 %v1699_v5, %v1375_v11  ;;  %v1827_v26 = vmul.f32 %v1811_v32, %v1795_v19  ;;  %v1874_v57 = vld [vmem:[#allocation3 + $0xc0] sm:$0xff]  ;;  %v1875_v38 = vld [vmem:[#allocation3 + $0xc8] sm:$0xff] }
 0x366   : > { %v1701_v13 = vpop.f32.mrf.mxu1  ;;  %v1768_v30 = vpop.f32.mrf.mxu0  ;;  %v1852_v2 = vadd.f32 %v1826_v42, %v1824_v47  ;;  %v1886_v7 = vmul.f32 %v1870_v60, %v1795_v19  ;;  %v1911_v49 = vadd.f32 %v1885_v22, %v1883_v8 }
 0x367   : > { %v1769_v10 = vadd.f32 %v1768_v30, %v1696_v34  ;;  %v1797_v39 = vmax.f32 %v1767_v18, 0.0  ;;  %v1702_v44 = vadd.f32 %v1701_v13, %v1375_v11  ;;  %v1828_v3 = vmul.f32 %v1812_v52, %v1796_v27  ;;  %v1817_v18 = vld [vmem:[#allocation3 + $0x50] sm:$0xff]  ;;  %v1818_v52 = vld [vmem:[#allocation3 + $0x58] sm:$0xff] }
 0x368   : > { %v1703_v20 = vpop.f32.mrf.mxu1  ;;  %v1772_v21 = vpop.f32.mrf.mxu0  ;;  %v1887_v56 = vmul.f32 %v1871_v37, %v1796_v27  ;;  %v1840_v9 = vadd.f32 %v1839_v17, %v1827_v26  ;;  %v1899_v11 = vadd.f32 %v1898_v15, %v1886_v7  ;;  %v1876_v27 = vld [vmem:[#allocation3 + $0xd0] sm:$0xff]  ;;  %v1819_v17 = vld [vmem:[#allocation3 + $0x60] sm:$0xff] }
 0x369   : > { %v1773_v53 = vadd.f32 %v1772_v21, %v1700_v28  ;;  %v1798_v41 = vmax.f32 %v1769_v10, 0.0  ;;  %v1704_v25 = vadd.f32 %v1703_v20, %v1380_v55  ;;  %v1829_v14 = vmul.f32 %v1813_v23, %v1797_v39  ;;  %v1877_v20 = vld [vmem:[#allocation3 + $0xd8] sm:$0xff]  ;;  %v1390_v26 = vpop.permute.xlu0 %1389  ;;  %v1878_v23 = vld [vmem:[#allocation3 + $0xe0] sm:$0xff] }
 0x36a   : > { %v1705_v58 = vpop.f32.mrf.mxu1  ;;  %v1774_v59 = vpop.f32.mrf.mxu0  ;;  %v1888_v31 = vmul.f32 %v1872_v35, %v1797_v39  ;;  %v1853_v19 = vadd.f32 %v1852_v2, %v1828_v3  ;;  %v1912_v34 = vadd.f32 %v1911_v49, %v1887_v56  ;;  %v1820_v35 = vld [vmem:[#allocation3 + $0x68] sm:$0xff]  ;;  %v1821_v49 = vld [vmem:[#allocation3 + $0x70] sm:$0xff] }
 0x36b   : > { %v1799_v24 = vmax.f32 %v1773_v53, 0.0  ;;  %v1775_v36 = vadd.f32 %v1774_v59, %v1702_v44  ;;  %v1706_v51 = vadd.f32 %v1705_v58, %v1380_v55  ;;  %v1830_v63 = vmul.f32 %v1814_v40, %v1798_v41  ;;  %v1879_v40 = vld [vmem:[#allocation3 + $0xe8] sm:$0xff] }
 0x36c   : > { %v1709_v4 = vpop.f32.mrf.mxu1  ;;  %v1776_v6 = vpop.f32.mrf.mxu0  ;;  %v1889_v0 = vmul.f32 %v1873_v50, %v1798_v41  ;;  %v1841_v46 = vadd.f32 %v1840_v9, %v1829_v14  ;;  %v1900_v33 = vadd.f32 %v1899_v11, %v1888_v31  ;;  %v1880_v9 = vld [vmem:[#allocation3 + $0xf0] sm:$0xff] }
 0x36d   : > { %v1777_v61 = vadd.f32 %v1776_v6, %v1704_v25  ;;  %v1800_v43 = vmax.f32 %v1775_v36, 0.0  ;;  %v1710_v12 = vadd.f32 %v1709_v4, %v1385_v1  ;;  %v1831_v48 = vmul.f32 %v1815_v29, %v1799_v24 }
 0x36e   : > { %v1711_v5 = vpop.f32.mrf.mxu1  ;;  %v1778_v62 = vpop.f32.mrf.mxu0  ;;  %v1890_v42 = vmul.f32 %v1874_v57, %v1799_v24  ;;  %v1854_v45 = vadd.f32 %v1853_v19, %v1830_v63  ;;  %v1913_v47 = vadd.f32 %v1912_v34, %v1889_v0  ;;  %v1822_v0 = vld [vmem:[#allocation3 + $0x78] sm:$0xff] }
 0x36f   : > { %v1779_v16 = vadd.f32 %v1778_v62, %v1706_v51  ;;  %v1801_v32 = vmax.f32 %v1777_v61, 0.0  ;;  %v1712_v60 = vadd.f32 %v1711_v5, %v1385_v1  ;;  %v1832_v37 = vmul.f32 %v1816_v54, %v1800_v43  ;;  %v1881_v57 = vld [vmem:[#allocation3 + $0xf8] sm:$0xff] }
 0x370   : > { %v1713_v13 = vpop.f32.mrf.mxu1  ;;  %v1782_v30 = vpop.f32.mrf.mxu0  ;;  %v1891_v39 = vmul.f32 %v1875_v38, %v1800_v43  ;;  %v1842_v44 = vadd.f32 %v1841_v46, %v1831_v48  ;;  %v1901_v15 = vadd.f32 %v1900_v33, %v1890_v42 }
 0x371   : > { %v1802_v28 = vmax.f32 %v1779_v16, 0.0  ;;  %v1783_v10 = vadd.f32 %v1782_v30, %v1710_v12  ;;  %v1833_v53 = vmul.f32 %v1817_v18, %v1801_v32  ;;  %v1892_v41 = vmul.f32 %v1876_v27, %v1801_v32 }
 0x372   : > { %v1715_v21 = vpop.f32.mrf.mxu1  ;;  %v1784_v22 = vpop.f32.mrf.mxu0  ;;  %v1714_v58 = vadd.f32 %v1713_v13, %v1390_v26  ;;  %v1855_v4 = vadd.f32 %v1854_v45, %v1832_v37  ;;  %v1914_v6 = vadd.f32 %v1913_v47, %v1891_v39 }
 0x373   : > { %v1803_v8 = vmax.f32 %v1783_v10, 0.0  ;;  %v1785_v59 = vadd.f32 %v1784_v22, %v1712_v60  ;;  %v1834_v2 = vmul.f32 %v1818_v52, %v1802_v28  ;;  %v1893_v7 = vmul.f32 %v1877_v20, %v1802_v28 }
 0x374   : > { %v1786_v55 = vpop.f32.mrf.mxu0  ;;  %v1716_v3 = vadd.f32 %v1715_v21, %v1390_v26  ;;  %v1843_v1 = vadd.f32 %v1842_v44, %v1833_v53  ;;  %v1902_v29 = vadd.f32 %v1901_v15, %v1892_v41 }
 0x375   : > { %v1835_v50 = vmul.f32 %v1819_v17, %v1803_v8  ;;  %v1894_v56 = vmul.f32 %v1878_v23, %v1803_v8  ;;  %v1804_v25 = vmax.f32 %v1785_v59, 0.0  ;;  %v1787_v24 = vadd.f32 %v1786_v55, %v1714_v58 }
 0x376   : > { %v1788_v36 = vpop.f32.mrf.mxu0  ;;  %v1856_v61 = vadd.f32 %v1855_v4, %v1834_v2  ;;  %v1915_v5 = vadd.f32 %v1914_v6, %v1893_v7 }
 0x377   : > { %v1789_v14 = vadd.f32 %v1788_v36, %v1716_v3  ;;  %v1836_v51 = vmul.f32 %v1820_v35, %v1804_v25  ;;  %v1895_v31 = vmul.f32 %v1879_v40, %v1804_v25  ;;  %v1805_v63 = vmax.f32 %v1787_v24, 0.0  ;;  %v1962_v3 = vpop.permute.xlu1 %1961 }
 0x378   : > { %v1844_v11 = vadd.f32 %v1843_v1, %v1835_v50  ;;  %v1903_v43 = vadd.f32 %v1902_v29, %v1894_v56 }
 0x379   : > { %v1806_v62 = vmax.f32 %v1789_v14, 0.0  ;;  %v1837_v12 = vmul.f32 %v1821_v49, %v1805_v63  ;;  %v1896_v16 = vmul.f32 %v1880_v9, %v1805_v63  ;;  %v1857_v19 = vadd.f32 %v1856_v61, %v1836_v51 }
 0x37a   : > { %v1916_v34 = vadd.f32 %v1915_v5, %v1895_v31 }
 0x37b   : > { %v1838_v48 = vmul.f32 %v1822_v0, %v1806_v62  ;;  %v1897_v54 = vmul.f32 %v1881_v57, %v1806_v62  ;;  %v1845_v38 = vadd.f32 %v1844_v11, %v1837_v12  ;;  %v1904_v32 = vadd.f32 %v1903_v43, %v1896_v16 }
 0x37d   : > { %v1858_v18 = vadd.f32 %v1857_v19, %v1838_v48  ;;  %v1917_v13 = vadd.f32 %v1916_v34, %v1897_v54  ;;  %v1846_v30 = vrot.slane %v1845_v38, 4  ;;  %v1905_v46 = vrot.slane %v1904_v32, 4 }
 0x37f   : > { %v1859_v42 = vrot.slane %v1858_v18, 4  ;;  %v1918_v27 = vrot.slane %v1917_v13, 4  ;;  %v1847_v28 = vadd.f32 %v1846_v30, %v1845_v38  ;;  %v1906_v10 = vadd.f32 %v1905_v46, %v1904_v32 }
 0x381   : > { %v1860_v33 = vadd.f32 %v1859_v42, %v1858_v18  ;;  %v1919_v45 = vadd.f32 %v1918_v27, %v1917_v13  ;;  %v1848_v47 = vrot.slane %v1847_v28, 2  ;;  %v1907_v60 = vrot.slane %v1906_v10, 2 }
 0x383   : > { %v1861_v52 = vrot.slane %v1860_v33, 2  ;;  %v1920_v20 = vrot.slane %v1919_v45, 2  ;;  %v1849_v21 = vadd.f32 %v1848_v47, %v1847_v28  ;;  %v1908_v22 = vadd.f32 %v1907_v60, %v1906_v10 }
 0x385   : > { %v1862_v26 = vadd.f32 %v1861_v52, %v1860_v33  ;;  %v1921_v37 = vadd.f32 %v1920_v20, %v1919_v45  ;;  %v1850_v39 = vrot.slane %v1849_v21, 1  ;;  %v1909_v53 = vrot.slane %v1908_v22, 1 }
 0x387   : > { %v1863_v8 = vrot.slane %v1862_v26, 1  ;;  %v1922_v17 = vrot.slane %v1921_v37, 1  ;;  %v1851_v23 = vadd.f32 %v1850_v39, %v1849_v21  ;;  %v1910_v44 = vadd.f32 %v1909_v53, %v1908_v22 }
 0x389   : > { %v1864_v41 = vadd.f32 %v1863_v8, %v1862_v26  ;;  %v1923_v58 = vadd.f32 %v1922_v17, %v1921_v37  ;;  %v1924_v55 = vsel %vm539_vm3, %v1851_v23, %v1910_v44 }
 0x38b   : > { %v1925_v59 = vsel %vm539_vm3, %v1864_v41, %v1923_v58 }
 0x38c   : > { %2028 = vmatprep.mubr.f32.mxu0 %v1925_v59 }
 0x38d   : > { %2029 = vmatmul.mubr.f32.vlgmr.msra.gmra.mxu0 %v1924_v55 }
 0x44d   : > { %v2343_v15 = vpop.f32.mrf.mxu0 }
 0x44f   : > { %v2344_v2 = vpop.f32.mrf.mxu0 }
 0x450   : > { %v2345_v7 = vadd.f32 %v2344_v2, %v2343_v15 }
 0x452   : > { %v2031_v35 = vadd.f32 %v2345_v7, %v1962_v3 }
 0x454   : > { %v2034_v40 = vsel %vm542_vm5, %v2031_v35, 0.0 }
 0x455   : > { %2035 = vst [vmem:[%s353_s17] sm:$0xff] %v2034_v40 }
 0x456   : > { %2505 = shalt.err (!%p2502_p3)
}
 0x457   : > { %s2506_s25 = scalar_lea.hbm %s3479_s18, 128  ;;  %s2510_s24 = scalar_lea.hbm %s3524_s9, 256 }
 0x458   : > { %p2507_p2 = scmp.ne.s32.totalorder %s3479_s18, %s2506_s25  ;;  %p2511_p6 = scmp.lt.s32.totalorder %s3479_s18, %s3524_s9 }
 0x459   : > { %p2512_p9 = scmp.lt.s32.totalorder %s2510_s24, %s2506_s25 }
 0x45a   : > { %p2508_p4 = pnand %p2507_p2, %p2668_p5 }
 0x45b   : > { %p2513_p7 = por %p2512_p9, %p2511_p6 }
 0x45c   : > { %p2509_p13 = pneg %p2508_p4 }
 0x45e   : > { %p2514_p10 = pnand %p2513_p7, %p2509_p13 }
 0x460   : > { %2517 = shalt.err (!%p2514_p10)
}
 0x461   : > { %2354 = dma.vmem_to_hbm [thread:$0]  (%p2668_p5), %s2051_s22, 128, %s3479_s18, %s2037_s28  }
 0x462 PF: > { %p2371_p12 = scmp.ge.s32.totalorder %s2560_s12, 2  ;;  %s2062_s26 = sand.u32 1, %s2548_s30  }
 0x463   : > { %p3581_p8 = scmp.ne.s32.totalorder %s3545_s20, 0  ;;  %s2063_s29 = scalar_lea.sflag [#allocation5], %s2062_s26 }
 0x465   : > { %p2364_p11 = pnand %p2371_p12, %p3581_p8 }
 0x467   : > { %p2365_p0 = pneg %p2364_p11 }
 0x469   : > { %2543 = dma.done.wait (%p2365_p0), %s2063_s29, 128  }
 0x46a   : > { %2545 = vsyncadd (%p2365_p0), %s2063_s29, 4294967168  ;;  %s3582_s13 = sld [smem:[#allocation12_spill]]  ;;  %p21_p1 = scmp.ge.s32.totalorder %s2655_s15, 4  }
 0x46b   : > { %s3583_s30 = smov %s2552_s10  ;;  %s3584_s10 = smov %s2556_s11 }
 0x46c   : > { %s3586_s12 = smov %s2655_s15  ;;  %23 = sbr.rel (!%p21_p1) target bundleno = 5 (0x5), region = 101 }
 0x470   : > { %s3585_s11 = smov %s3582_s13 }
 0x471   :  { %2068 = vsyncpa [#allocation4], 1 }
 0x472   :  { %2070 = vsyncpa [#allocation4 + $0x1], 1 }
 0x473   :  { %2071 = vsyncpa [#allocation7], 1 }
 0x474   :  { %2072 = vsyncpa [#allocation5], 1 }
 0x475   :  { %2074 = vsyncpa [#allocation5 + $0x1], 1 }

</bundles_post_ra>
